<compile_context>
chip_gen: v7x
topology: tpu7x:2x2x1
jax: 0.10.0
libtpu: 0.0.40
codegen_flags: <defaults>
</compile_context>

<pallas_src>
import jax
import jax.numpy as jnp
from jax.experimental import pallas as pl
from jax.experimental.pallas import tpu as pltpu


# ----------------------------------------------------------------------------- GELU

def _gelu_exact(x):
    # nn.GELU() default (approximate='none'): 0.5 * x * (1 + erf(x / sqrt(2))).
    # erf via Abramowitz & Stegun 7.1.26 rational approximation (|abs err| < 1.5e-7, i.e.
    # at f32 precision -> numerically matches PyTorch's exact-erf GELU).
    # Sign handling is a single select on (1 + erf); exp and the divide run on the EUP.
    z = x * 0.7071067811865476
    az = jnp.abs(z)
    t = 1.0 / (1.0 + 0.3275911 * az)
    poly = ((((1.061405429 * t - 1.453152027) * t + 1.421413741) * t
             - 0.284496736) * t + 0.254829592) * t
    pe = poly * jnp.exp(-az * az)                    # = 1 - erf(|z|)
    one_plus_erf = jnp.where(x >= 0, 2.0 - pe, pe)   # 1 + erf(z), single select / no negate
    return 0.5 * x * one_plus_erf


# ----------------------------------------------------------------------------- kernel

# p_chan slab indices (each slab is a (C, 1) per-channel vector, C on sublanes).
(_DW1_W0, _DW1_W1, _DW1_W2, _DW1_B, _PW1_B, _BN1_G, _BN1_B,
 _DW2_W0, _DW2_W1, _DW2_W2, _DW2_B, _PW2_B, _BN2_G, _BN2_B,
 _A1_B, _A2_B) = range(16)
_N_CHAN_SLABS = 16

# p_mat slab indices (each slab is a (C, C) matrix; attention mats are zero-padded).
_PW1_W, _PW2_W, _A1_W, _A2_W = range(4)


def _residual_block_kernel(x_ref, p_chan_ref, p_mat_ref, out_ref):
    x = x_ref[...]                                   # (B, C, L) f32, native NCL layout
    B, C, L = x.shape

    def vec(k):                                      # (C, 1): broadcasts over (B, ., L)
        return p_chan_ref[k]

    # Boundary masks for the k=3 depthwise conv, hoisted (reused by both depthwise calls).
    l_idx = jax.lax.broadcasted_iota(jnp.int32, (1, 1, L), 2)
    not_first = l_idx > 0
    not_last = l_idx < (L - 1)

    def depthwise3(h, k0):
        # Conv1d(k=3, pad=1, groups=C): out[l] = w0*h[l-1] + w1*h[l] + w2*h[l+1] + b.
        # The +/-1 shifts along L are XLU lane rotations (pltpu.roll) with the wrapped
        # boundary element masked to zero -- O(B*C*L), no shift matrices, no pad scratch.
        h_m1 = jnp.where(not_first, pltpu.roll(h, 1, axis=2), 0.0)      # h[l-1], 0 at l==0
        h_p1 = jnp.where(not_last, pltpu.roll(h, L - 1, axis=2), 0.0)   # h[l+1], 0 at l==L-1
        return h_m1 * vec(k0) + h * vec(k0 + 1) + h_p1 * vec(k0 + 2) + vec(k0 + 3)

    def pointwise(h, w, bias):
        # Conv1d(k=1): per-batch (C_out, C_in) @ (C_in, Lh) on the MXU; both operands are
        # already MXU-natural (w contracts on its lane dim as LHS, h[b] on its sublane dim
        # as RHS) -> no in-kernel weight/data transposes.
        # TODO(synk): cast operands to bf16 (keep f32 accumulation) at production C >= 128.
        # TODO(synk): at production B, replace the unrolled loop with a 'parallel' grid axis.
        nb = h.shape[0]
        out = jnp.stack(
            [jnp.dot(w, h[b], preferred_element_type=jnp.float32) for b in range(nb)],
            axis=0)
        return out + bias

    def batchnorm(h, g, b):
        # BatchNorm1d training-mode forward: biased batch stats per channel over (B, L).
        # Centered two-pass variance (robust vs E[h^2]-E[h]^2 cancellation), then folded
        # into one FMA per element via precomputed scale/shift.
        m = jnp.mean(jnp.mean(h, axis=2, keepdims=True), axis=0, keepdims=True)   # (1, C, 1)
        d = h - m
        v = jnp.mean(jnp.mean(d * d, axis=2, keepdims=True), axis=0, keepdims=True)
        scale = g * jax.lax.rsqrt(v + 1e-5)
        shift = b - m * scale
        return h * scale + shift

    # ---- channel attention: AdaptiveAvgPool1d(1) -> 1x1 conv -> GELU -> 1x1 conv -> Sigmoid.
    # The attention path reuses the pointwise helper on an L=1 "sequence"; its weights were
    # zero-padded to (C, C) in the wrapper so the padded rows/cols contribute exactly zero
    # (gelu(0) == 0), which lets them live in the same packed matrix stack.
    pooled = jnp.mean(x, axis=2, keepdims=True)                                  # (B, C, 1)
    a1 = _gelu_exact(pointwise(pooled, p_mat_ref[_A1_W], vec(_A1_B)))            # (B, C, 1)
    attn = jax.nn.sigmoid(pointwise(a1, p_mat_ref[_A2_W], vec(_A2_B)))           # (B, C, 1)

    # ---- trunk: DWConv3 -> PWConv -> BN -> GELU -> DWConv3 -> PWConv -> BN
    h = depthwise3(x, _DW1_W0)
    h = pointwise(h, p_mat_ref[_PW1_W], vec(_PW1_B))
    h = batchnorm(h, vec(_BN1_G), vec(_BN1_B))
    h = _gelu_exact(h)
    h = depthwise3(h, _DW2_W0)
    h = pointwise(h, p_mat_ref[_PW2_W], vec(_PW2_B))
    h = batchnorm(h, vec(_BN2_G), vec(_BN2_B))

    out_ref[...] = x + h * attn


# ----------------------------------------------------------------------------- wrapper

def _pack_params(p, C):
    """Pack the 16 small parameter tensors into two stacked VMEM inputs (3 DMAs total).

    p_chan: (16, C, 1) -- per-channel vectors, C on sublanes so they broadcast over
                           (B, C, L) with no in-kernel relayout.
    p_mat:  (4, C, C)  -- pw1_w, pw2_w, and the attention 1x1-conv weights zero-padded to
                           (C, C); padded rows/cols contribute exactly zero.
    """
    O = C // 8
    f32 = jnp.float32
    chan = [
        p["dw1_w"][0], p["dw1_w"][1], p["dw1_w"][2], p["dw1_b"],
        p["pw1_b"], p["bn1_g"], p["bn1_b"],
        p["dw2_w"][0], p["dw2_w"][1], p["dw2_w"][2], p["dw2_b"],
        p["pw2_b"], p["bn2_g"], p["bn2_b"],
        jnp.concatenate([p["a1_b"].astype(f32), jnp.zeros((C - O,), f32)]),
        p["a2_b"],
    ]
    p_chan = jnp.stack([v.astype(f32).reshape(C, 1) for v in chan], axis=0)   # (16, C, 1)
    a1_w_pad = jnp.zeros((C, C), f32).at[:O, :].set(p["a1_w"].astype(f32))
    a2_w_pad = jnp.zeros((C, C), f32).at[:, :O].set(p["a2_w"].astype(f32))
    p_mat = jnp.stack(
        [p["pw1_w"].astype(f32), p["pw2_w"].astype(f32), a1_w_pad, a2_w_pad], axis=0)
    return p_chan, p_mat


@jax.jit
def residual_block(x_ncl, params):
    """x_ncl: (B, C, L) float32, PyTorch Conv1d layout; returns the same layout."""
    B, C, L = x_ncl.shape
    assert C >= 8, "channel attention needs channels // 8 >= 1"
    # Lane-dense layout: L sits on the 128-wide lane axis (lane-dense stores + VPU).
    # TODO(synk): general L via in-kernel padding + stats masks.
    assert L % 128 == 0, "this kernel keeps L on the lane axis; L must be a multiple of 128"

    p_chan, p_mat = _pack_params(params, C)

    # Single grid point: the whole (toy) problem lives in VMEM; BatchNorm and the attention
    # pool couple the full (B, L) extent.
    # TODO(synk): L-tiled grid + two-pass BN (sum/sumsq scratch across an 'arbitrary' L
    # axis, normalize in a second pass), independent axis marked 'parallel' for v7x's
    # second TensorCore, and per-generation tile sizes / vmem_limit_bytes.
    return pl.pallas_call(
        _residual_block_kernel,
        out_shape=jax.ShapeDtypeStruct((B, C, L), jnp.float32),
        in_specs=[pl.BlockSpec(memory_space=pltpu.MemorySpace.VMEM)] * 3,
        out_specs=pl.BlockSpec(memory_space=pltpu.MemorySpace.VMEM),
        compiler_params=pltpu.CompilerParams(
            vmem_limit_bytes=32 * 1024 * 1024,   # fits v5e/v6e (128 MiB) and v7x (64 MiB)
        ),
    )(x_ncl.astype(jnp.float32), p_chan, p_mat)


def init_params(key, channels):
    ks = jax.random.split(key, 16)

    def rnd(k, shape, scale=0.2):
        return (scale * jax.random.normal(k, shape)).astype(jnp.float32)

    c8 = channels // 8
    return {
        # DepthwiseSeparableConv #1
        "dw1_w": rnd(ks[0], (3, channels)),          # PyTorch depthwise weight (C,1,3) -> (3,C)
        "dw1_b": rnd(ks[1], (channels,)),
        "pw1_w": rnd(ks[2], (channels, channels)),   # (C_out, C_in)
        "pw1_b": rnd(ks[3], (channels,)),
        "bn1_g": 1.0 + rnd(ks[4], (channels,), 0.1),
        "bn1_b": rnd(ks[5], (channels,), 0.1),
        # DepthwiseSeparableConv #2
        "dw2_w": rnd(ks[6], (3, channels)),
        "dw2_b": rnd(ks[7], (channels,)),
        "pw2_w": rnd(ks[8], (channels, channels)),
        "pw2_b": rnd(ks[9], (channels,)),
        "bn2_g": 1.0 + rnd(ks[10], (channels,), 0.1),
        "bn2_b": rnd(ks[11], (channels,), 0.1),
        # channel attention (1x1 convs)
        "a1_w": rnd(ks[12], (c8, channels)),
        "a1_b": rnd(ks[13], (c8,)),
        "a2_w": rnd(ks[14], (channels, c8)),
        "a2_b": rnd(ks[15], (channels,)),
    }


# ----------------------------------------------------------------------------- pure-JAX reference

def reference_forward(x, p):
    # x: (B, C, L) NCL, training-mode BatchNorm, exact-erf GELU.
    B, C, L = x.shape
    x = x.astype(jnp.float32)
    gelu = lambda t: 0.5 * t * (1.0 + jax.scipy.special.erf(t / jnp.sqrt(2.0)))

    def dw(h, w, b):                                   # w: (3, C), b: (C,)
        hp = jnp.pad(h, ((0, 0), (0, 0), (1, 1)))
        return (hp[:, :, 0:L] * w[0][None, :, None]
                + hp[:, :, 1:L + 1] * w[1][None, :, None]
                + hp[:, :, 2:L + 2] * w[2][None, :, None]) + b[None, :, None]

    def pw(h, w, b):                                   # w: (O, C), b: (O,)
        return jnp.einsum("oc,bcl->bol", w, h) + b[None, :, None]

    def bn(h, g, b):
        m = h.mean(axis=(0, 2), keepdims=True)
        v = ((h - m) ** 2).mean(axis=(0, 2), keepdims=True)
        return (h - m) / jnp.sqrt(v + 1e-5) * g[None, :, None] + b[None, :, None]

    pooled = x.mean(axis=2, keepdims=True)             # (B, C, 1)
    a1 = gelu(jnp.einsum("oc,bcl->bol", p["a1_w"], pooled) + p["a1_b"][None, :, None])
    attn = jax.nn.sigmoid(
        jnp.einsum("co,bol->bcl", p["a2_w"], a1) + p["a2_b"][None, :, None])      # (B, C, 1)

    h = dw(x, p["dw1_w"], p["dw1_b"])
    h = pw(h, p["pw1_w"], p["pw1_b"])
    h = bn(h, p["bn1_g"], p["bn1_b"])
    h = gelu(h)
    h = dw(h, p["dw2_w"], p["dw2_b"])
    h = pw(h, p["pw2_w"], p["pw2_b"])
    h = bn(h, p["bn2_g"], p["bn2_b"])
    return x + h * attn


# ----------------------------------------------------------------------------- main

if __name__ == "__main__":
    B, C, L = 2, 16, 128          # channels >= 8 (for C // 8); L a multiple of 128 (lanes)
    key = jax.random.PRNGKey(0)
    kx, kp = jax.random.split(key)
    x = jax.random.normal(kx, (B, C, L), dtype=jnp.float32)    # PyTorch NCL layout
    params = init_params(kp, C)

    out = jax.block_until_ready(residual_block(x, params))
    ref = jax.block_until_ready(reference_forward(x, params))

    assert out.shape == (B, C, L), out.shape
    max_err = float(jnp.max(jnp.abs(out - ref)))
    assert max_err < 2e-3, f"mismatch vs reference: {max_err}"
    print("KERNEL_OK")
</pallas_src>

<mosaic_0001>
module attributes {stable_mosaic.version = 11 : i64} {
  func.func @_residual_block_kernel(%arg0: memref<2x16x128xf32, #tpu.memory_space<vmem>>, %arg1: memref<16x16x1xf32, #tpu.memory_space<vmem>>, %arg2: memref<4x16x16xf32, #tpu.memory_space<vmem>>, %arg3: memref<2x16x128xf32, #tpu.memory_space<vmem>>) attributes {dimension_semantics = [], scalar_prefetch = 0 : i64, scratch_operands = 0 : i64, tpu.core_type = #tpu.core_type<tc>} {
    %c0 = arith.constant 0 : index
    %c0_0 = arith.constant 0 : index
    %c0_1 = arith.constant 0 : index
    %0 = vector.load %arg0[%c0, %c0_0, %c0_1] : memref<2x16x128xf32, #tpu.memory_space<vmem>>, vector<2x16x128xf32>
    %1 = tpu.iota {dimensions = array<i32: 2>} : vector<1x1x128xi32>
    %c0_i32 = arith.constant 0 : i32
    %2 = vector.broadcast %c0_i32 : i32 to vector<1x1x128xi32>
    %3 = arith.cmpi sgt, %1, %2 : vector<1x1x128xi32>
    %c127_i32 = arith.constant 127 : i32
    %4 = vector.broadcast %c127_i32 : i32 to vector<1x1x128xi32>
    %5 = arith.cmpi slt, %1, %4 : vector<1x1x128xi32>
    %cst = arith.constant dense<0.000000e+00> : vector<2x16xf32>
    %6 = vector.multi_reduction <add>, %0, %cst [2] : vector<2x16x128xf32> to vector<2x16xf32>
    %7 = vector.shape_cast %6 : vector<2x16xf32> to vector<2x16x1xf32>
    %cst_2 = arith.constant 1.280000e+02 : f32
    %8 = vector.broadcast %cst_2 : f32 to vector<2x16x1xf32>
    %9 = arith.divf %7, %8 : vector<2x16x1xf32>
    %c2 = arith.constant 2 : index
    %c0_3 = arith.constant 0 : index
    %c0_4 = arith.constant 0 : index
    %10 = vector.load %arg2[%c2, %c0_3, %c0_4] : memref<4x16x16xf32, #tpu.memory_space<vmem>>, vector<1x16x16xf32>
    %11 = vector.shape_cast %10 : vector<1x16x16xf32> to vector<16x16xf32>
    %c14 = arith.constant 14 : index
    %c0_5 = arith.constant 0 : index
    %c0_6 = arith.constant 0 : index
    %12 = vector.load %arg1[%c14, %c0_5, %c0_6] : memref<16x16x1xf32, #tpu.memory_space<vmem>>, vector<1x16x1xf32>
    %13 = vector.shape_cast %12 : vector<1x16x1xf32> to vector<16x1xf32>
    %14 = vector.extract_strided_slice %9 {offsets = [0, 0, 0], sizes = [1, 16, 1], strides = [1, 1, 1]} : vector<2x16x1xf32> to vector<1x16x1xf32>
    %15 = vector.shape_cast %14 : vector<1x16x1xf32> to vector<16x1xf32>
    %cst_7 = arith.constant dense<0.000000e+00> : vector<16x1xf32>
    %16 = tpu.matmul %11, %15, %cst_7 {dimension_numbers = #tpu.dot_dimension_numbers<[1], [0], [0], [1], [0, 0, 1, 1], [], []>} : vector<16x16xf32>, vector<16x1xf32>, vector<16x1xf32> -> vector<16x1xf32>
    %17 = vector.extract_strided_slice %9 {offsets = [1, 0, 0], sizes = [1, 16, 1], strides = [1, 1, 1]} : vector<2x16x1xf32> to vector<1x16x1xf32>
    %18 = vector.shape_cast %17 : vector<1x16x1xf32> to vector<16x1xf32>
    %cst_8 = arith.constant dense<0.000000e+00> : vector<16x1xf32>
    %19 = tpu.matmul %11, %18, %cst_8 {dimension_numbers = #tpu.dot_dimension_numbers<[1], [0], [0], [1], [0, 0, 1, 1], [], []>} : vector<16x16xf32>, vector<16x1xf32>, vector<16x1xf32> -> vector<16x1xf32>
    %20 = vector.shape_cast %16 : vector<16x1xf32> to vector<1x16x1xf32>
    %21 = vector.shape_cast %19 : vector<16x1xf32> to vector<1x16x1xf32>
    %22 = tpu.concatenate %20, %21 in 0 : vector<1x16x1xf32>, vector<1x16x1xf32> -> vector<2x16x1xf32>
    %23 = vector.shape_cast %13 : vector<16x1xf32> to vector<1x16x1xf32>
    %24 = vector.broadcast %23 : vector<1x16x1xf32> to vector<2x16x1xf32>
    %25 = arith.addf %22, %24 : vector<2x16x1xf32>
    %cst_9 = arith.constant 0.707106769 : f32
    %26 = vector.broadcast %cst_9 : f32 to vector<2x16x1xf32>
    %27 = arith.mulf %25, %26 : vector<2x16x1xf32>
    %28 = math.absf %27 : vector<2x16x1xf32>
    %cst_10 = arith.constant 0.327591091 : f32
    %29 = vector.broadcast %cst_10 : f32 to vector<2x16x1xf32>
    %30 = arith.mulf %29, %28 : vector<2x16x1xf32>
    %cst_11 = arith.constant 1.000000e+00 : f32
    %31 = vector.broadcast %cst_11 : f32 to vector<2x16x1xf32>
    %32 = arith.addf %31, %30 : vector<2x16x1xf32>
    %cst_12 = arith.constant 1.000000e+00 : f32
    %33 = vector.broadcast %cst_12 : f32 to vector<2x16x1xf32>
    %34 = arith.divf %33, %32 : vector<2x16x1xf32>
    %cst_13 = arith.constant 1.06140542 : f32
    %35 = vector.broadcast %cst_13 : f32 to vector<2x16x1xf32>
    %36 = arith.mulf %35, %34 : vector<2x16x1xf32>
    %cst_14 = arith.constant 1.45315206 : f32
    %37 = vector.broadcast %cst_14 : f32 to vector<2x16x1xf32>
    %38 = arith.subf %36, %37 : vector<2x16x1xf32>
    %39 = arith.mulf %38, %34 : vector<2x16x1xf32>
    %cst_15 = arith.constant 1.42141378 : f32
    %40 = vector.broadcast %cst_15 : f32 to vector<2x16x1xf32>
    %41 = arith.addf %39, %40 : vector<2x16x1xf32>
    %42 = arith.mulf %41, %34 : vector<2x16x1xf32>
    %cst_16 = arith.constant 0.284496725 : f32
    %43 = vector.broadcast %cst_16 : f32 to vector<2x16x1xf32>
    %44 = arith.subf %42, %43 : vector<2x16x1xf32>
    %45 = arith.mulf %44, %34 : vector<2x16x1xf32>
    %cst_17 = arith.constant 0.254829586 : f32
    %46 = vector.broadcast %cst_17 : f32 to vector<2x16x1xf32>
    %47 = arith.addf %45, %46 : vector<2x16x1xf32>
    %48 = arith.mulf %47, %34 : vector<2x16x1xf32>
    %cst_18 = arith.constant 0.000000e+00 : f32
    %49 = vector.broadcast %cst_18 : f32 to vector<2x16x1xf32>
    %50 = arith.subf %49, %28 : vector<2x16x1xf32>
    %51 = arith.mulf %50, %28 : vector<2x16x1xf32>
    %52 = math.exp %51 : vector<2x16x1xf32>
    %53 = arith.mulf %48, %52 : vector<2x16x1xf32>
    %cst_19 = arith.constant 0.000000e+00 : f32
    %54 = vector.broadcast %cst_19 : f32 to vector<2x16x1xf32>
    %55 = arith.cmpf oge, %25, %54 : vector<2x16x1xf32>
    %cst_20 = arith.constant 2.000000e+00 : f32
    %56 = vector.broadcast %cst_20 : f32 to vector<2x16x1xf32>
    %57 = arith.subf %56, %53 : vector<2x16x1xf32>
    %58 = arith.select %55, %57, %53 : vector<2x16x1xi1>, vector<2x16x1xf32>
    %cst_21 = arith.constant 5.000000e-01 : f32
    %59 = vector.broadcast %cst_21 : f32 to vector<2x16x1xf32>
    %60 = arith.mulf %59, %25 : vector<2x16x1xf32>
    %61 = arith.mulf %60, %58 : vector<2x16x1xf32>
    %c3 = arith.constant 3 : index
    %c0_22 = arith.constant 0 : index
    %c0_23 = arith.constant 0 : index
    %62 = vector.load %arg2[%c3, %c0_22, %c0_23] : memref<4x16x16xf32, #tpu.memory_space<vmem>>, vector<1x16x16xf32>
    %63 = vector.shape_cast %62 : vector<1x16x16xf32> to vector<16x16xf32>
    %c15 = arith.constant 15 : index
    %c0_24 = arith.constant 0 : index
    %c0_25 = arith.constant 0 : index
    %64 = vector.load %arg1[%c15, %c0_24, %c0_25] : memref<16x16x1xf32, #tpu.memory_space<vmem>>, vector<1x16x1xf32>
    %65 = vector.shape_cast %64 : vector<1x16x1xf32> to vector<16x1xf32>
    %66 = vector.extract_strided_slice %61 {offsets = [0, 0, 0], sizes = [1, 16, 1], strides = [1, 1, 1]} : vector<2x16x1xf32> to vector<1x16x1xf32>
    %67 = vector.shape_cast %66 : vector<1x16x1xf32> to vector<16x1xf32>
    %cst_26 = arith.constant dense<0.000000e+00> : vector<16x1xf32>
    %68 = tpu.matmul %63, %67, %cst_26 {dimension_numbers = #tpu.dot_dimension_numbers<[1], [0], [0], [1], [0, 0, 1, 1], [], []>} : vector<16x16xf32>, vector<16x1xf32>, vector<16x1xf32> -> vector<16x1xf32>
    %69 = vector.extract_strided_slice %61 {offsets = [1, 0, 0], sizes = [1, 16, 1], strides = [1, 1, 1]} : vector<2x16x1xf32> to vector<1x16x1xf32>
    %70 = vector.shape_cast %69 : vector<1x16x1xf32> to vector<16x1xf32>
    %cst_27 = arith.constant dense<0.000000e+00> : vector<16x1xf32>
    %71 = tpu.matmul %63, %70, %cst_27 {dimension_numbers = #tpu.dot_dimension_numbers<[1], [0], [0], [1], [0, 0, 1, 1], [], []>} : vector<16x16xf32>, vector<16x1xf32>, vector<16x1xf32> -> vector<16x1xf32>
    %72 = vector.shape_cast %68 : vector<16x1xf32> to vector<1x16x1xf32>
    %73 = vector.shape_cast %71 : vector<16x1xf32> to vector<1x16x1xf32>
    %74 = tpu.concatenate %72, %73 in 0 : vector<1x16x1xf32>, vector<1x16x1xf32> -> vector<2x16x1xf32>
    %75 = vector.shape_cast %65 : vector<16x1xf32> to vector<1x16x1xf32>
    %76 = vector.broadcast %75 : vector<1x16x1xf32> to vector<2x16x1xf32>
    %77 = arith.addf %74, %76 : vector<2x16x1xf32>
    %78 = arith.negf %77 : vector<2x16x1xf32>
    %79 = math.exp %78 : vector<2x16x1xf32>
    %cst_28 = arith.constant 1.000000e+00 : f32
    %80 = vector.broadcast %cst_28 : f32 to vector<2x16x1xf32>
    %81 = arith.addf %80, %79 : vector<2x16x1xf32>
    %82 = arith.divf %80, %81 : vector<2x16x1xf32>
    %c1_i32 = arith.constant 1 : i32
    %83 = tpu.dynamic_rotate %0 by %c1_i32 dim 2 : vector<2x16x128xf32>, i32 -> vector<2x16x128xf32>
    %cst_29 = arith.constant 0.000000e+00 : f32
    %84 = vector.shape_cast %3 : vector<1x1x128xi1> to vector<1x1x128xi1>
    %85 = vector.broadcast %84 : vector<1x1x128xi1> to vector<2x16x128xi1>
    %86 = vector.broadcast %cst_29 : f32 to vector<2x16x128xf32>
    %87 = arith.select %85, %83, %86 : vector<2x16x128xi1>, vector<2x16x128xf32>
    %c127_i32_30 = arith.constant 127 : i32
    %88 = tpu.dynamic_rotate %0 by %c127_i32_30 dim 2 : vector<2x16x128xf32>, i32 -> vector<2x16x128xf32>
    %cst_31 = arith.constant 0.000000e+00 : f32
    %89 = vector.shape_cast %5 : vector<1x1x128xi1> to vector<1x1x128xi1>
    %90 = vector.broadcast %89 : vector<1x1x128xi1> to vector<2x16x128xi1>
    %91 = vector.broadcast %cst_31 : f32 to vector<2x16x128xf32>
    %92 = arith.select %90, %88, %91 : vector<2x16x128xi1>, vector<2x16x128xf32>
    %c0_32 = arith.constant 0 : index
    %c0_33 = arith.constant 0 : index
    %c0_34 = arith.constant 0 : index
    %93 = vector.load %arg1[%c0_32, %c0_33, %c0_34] : memref<16x16x1xf32, #tpu.memory_space<vmem>>, vector<1x16x1xf32>
    %94 = vector.shape_cast %93 : vector<1x16x1xf32> to vector<16x1xf32>
    %95 = vector.shape_cast %94 : vector<16x1xf32> to vector<1x16x1xf32>
    %96 = vector.broadcast %95 : vector<1x16x1xf32> to vector<2x16x128xf32>
    %97 = arith.mulf %87, %96 : vector<2x16x128xf32>
    %c1 = arith.constant 1 : index
    %c0_35 = arith.constant 0 : index
    %c0_36 = arith.constant 0 : index
    %98 = vector.load %arg1[%c1, %c0_35, %c0_36] : memref<16x16x1xf32, #tpu.memory_space<vmem>>, vector<1x16x1xf32>
    %99 = vector.shape_cast %98 : vector<1x16x1xf32> to vector<16x1xf32>
    %100 = vector.shape_cast %99 : vector<16x1xf32> to vector<1x16x1xf32>
    %101 = vector.broadcast %100 : vector<1x16x1xf32> to vector<2x16x128xf32>
    %102 = arith.mulf %0, %101 : vector<2x16x128xf32>
    %103 = arith.addf %97, %102 : vector<2x16x128xf32>
    %c2_37 = arith.constant 2 : index
    %c0_38 = arith.constant 0 : index
    %c0_39 = arith.constant 0 : index
    %104 = vector.load %arg1[%c2_37, %c0_38, %c0_39] : memref<16x16x1xf32, #tpu.memory_space<vmem>>, vector<1x16x1xf32>
    %105 = vector.shape_cast %104 : vector<1x16x1xf32> to vector<16x1xf32>
    %106 = vector.shape_cast %105 : vector<16x1xf32> to vector<1x16x1xf32>
    %107 = vector.broadcast %106 : vector<1x16x1xf32> to vector<2x16x128xf32>
    %108 = arith.mulf %92, %107 : vector<2x16x128xf32>
    %109 = arith.addf %103, %108 : vector<2x16x128xf32>
    %c3_40 = arith.constant 3 : index
    %c0_41 = arith.constant 0 : index
    %c0_42 = arith.constant 0 : index
    %110 = vector.load %arg1[%c3_40, %c0_41, %c0_42] : memref<16x16x1xf32, #tpu.memory_space<vmem>>, vector<1x16x1xf32>
    %111 = vector.shape_cast %110 : vector<1x16x1xf32> to vector<16x1xf32>
    %112 = vector.shape_cast %111 : vector<16x1xf32> to vector<1x16x1xf32>
    %113 = vector.broadcast %112 : vector<1x16x1xf32> to vector<2x16x128xf32>
    %114 = arith.addf %109, %113 : vector<2x16x128xf32>
    %c0_43 = arith.constant 0 : index
    %c0_44 = arith.constant 0 : index
    %c0_45 = arith.constant 0 : index
    %115 = vector.load %arg2[%c0_43, %c0_44, %c0_45] : memref<4x16x16xf32, #tpu.memory_space<vmem>>, vector<1x16x16xf32>
    %116 = vector.shape_cast %115 : vector<1x16x16xf32> to vector<16x16xf32>
    %c4 = arith.constant 4 : index
    %c0_46 = arith.constant 0 : index
    %c0_47 = arith.constant 0 : index
    %117 = vector.load %arg1[%c4, %c0_46, %c0_47] : memref<16x16x1xf32, #tpu.memory_space<vmem>>, vector<1x16x1xf32>
    %118 = vector.shape_cast %117 : vector<1x16x1xf32> to vector<16x1xf32>
    %119 = vector.extract_strided_slice %114 {offsets = [0, 0, 0], sizes = [1, 16, 128], strides = [1, 1, 1]} : vector<2x16x128xf32> to vector<1x16x128xf32>
    %120 = vector.shape_cast %119 : vector<1x16x128xf32> to vector<16x128xf32>
    %cst_48 = arith.constant dense<0.000000e+00> : vector<16x128xf32>
    %121 = tpu.matmul %116, %120, %cst_48 {dimension_numbers = #tpu.dot_dimension_numbers<[1], [0], [0], [1], [0, 0, 1, 1], [], []>} : vector<16x16xf32>, vector<16x128xf32>, vector<16x128xf32> -> vector<16x128xf32>
    %122 = vector.extract_strided_slice %114 {offsets = [1, 0, 0], sizes = [1, 16, 128], strides = [1, 1, 1]} : vector<2x16x128xf32> to vector<1x16x128xf32>
    %123 = vector.shape_cast %122 : vector<1x16x128xf32> to vector<16x128xf32>
    %cst_49 = arith.constant dense<0.000000e+00> : vector<16x128xf32>
    %124 = tpu.matmul %116, %123, %cst_49 {dimension_numbers = #tpu.dot_dimension_numbers<[1], [0], [0], [1], [0, 0, 1, 1], [], []>} : vector<16x16xf32>, vector<16x128xf32>, vector<16x128xf32> -> vector<16x128xf32>
    %125 = vector.shape_cast %121 : vector<16x128xf32> to vector<1x16x128xf32>
    %126 = vector.shape_cast %124 : vector<16x128xf32> to vector<1x16x128xf32>
    %127 = tpu.concatenate %125, %126 in 0 : vector<1x16x128xf32>, vector<1x16x128xf32> -> vector<2x16x128xf32>
    %128 = vector.shape_cast %118 : vector<16x1xf32> to vector<1x16x1xf32>
    %129 = vector.broadcast %128 : vector<1x16x1xf32> to vector<2x16x128xf32>
    %130 = arith.addf %127, %129 : vector<2x16x128xf32>
    %c5 = arith.constant 5 : index
    %c0_50 = arith.constant 0 : index
    %c0_51 = arith.constant 0 : index
    %131 = vector.load %arg1[%c5, %c0_50, %c0_51] : memref<16x16x1xf32, #tpu.memory_space<vmem>>, vector<1x16x1xf32>
    %132 = vector.shape_cast %131 : vector<1x16x1xf32> to vector<16x1xf32>
    %c6 = arith.constant 6 : index
    %c0_52 = arith.constant 0 : index
    %c0_53 = arith.constant 0 : index
    %133 = vector.load %arg1[%c6, %c0_52, %c0_53] : memref<16x16x1xf32, #tpu.memory_space<vmem>>, vector<1x16x1xf32>
    %134 = vector.shape_cast %133 : vector<1x16x1xf32> to vector<16x1xf32>
    %cst_54 = arith.constant dense<0.000000e+00> : vector<2x16xf32>
    %135 = vector.multi_reduction <add>, %130, %cst_54 [2] : vector<2x16x128xf32> to vector<2x16xf32>
    %136 = vector.shape_cast %135 : vector<2x16xf32> to vector<2x16x1xf32>
    %cst_55 = arith.constant 1.280000e+02 : f32
    %137 = vector.broadcast %cst_55 : f32 to vector<2x16x1xf32>
    %138 = arith.divf %136, %137 : vector<2x16x1xf32>
    %cst_56 = arith.constant dense<0.000000e+00> : vector<16x1xf32>
    %139 = vector.multi_reduction <add>, %138, %cst_56 [0] : vector<2x16x1xf32> to vector<16x1xf32>
    %140 = vector.shape_cast %139 : vector<16x1xf32> to vector<1x16x1xf32>
    %cst_57 = arith.constant 2.000000e+00 : f32
    %141 = vector.broadcast %cst_57 : f32 to vector<1x16x1xf32>
    %142 = arith.divf %140, %141 : vector<1x16x1xf32>
    %143 = vector.broadcast %142 : vector<1x16x1xf32> to vector<2x16x128xf32>
    %144 = arith.subf %130, %143 : vector<2x16x128xf32>
    %145 = arith.mulf %144, %144 : vector<2x16x128xf32>
    %cst_58 = arith.constant dense<0.000000e+00> : vector<2x16xf32>
    %146 = vector.multi_reduction <add>, %145, %cst_58 [2] : vector<2x16x128xf32> to vector<2x16xf32>
    %147 = vector.shape_cast %146 : vector<2x16xf32> to vector<2x16x1xf32>
    %cst_59 = arith.constant 1.280000e+02 : f32
    %148 = vector.broadcast %cst_59 : f32 to vector<2x16x1xf32>
    %149 = arith.divf %147, %148 : vector<2x16x1xf32>
    %cst_60 = arith.constant dense<0.000000e+00> : vector<16x1xf32>
    %150 = vector.multi_reduction <add>, %149, %cst_60 [0] : vector<2x16x1xf32> to vector<16x1xf32>
    %151 = vector.shape_cast %150 : vector<16x1xf32> to vector<1x16x1xf32>
    %cst_61 = arith.constant 2.000000e+00 : f32
    %152 = vector.broadcast %cst_61 : f32 to vector<1x16x1xf32>
    %153 = arith.divf %151, %152 : vector<1x16x1xf32>
    %cst_62 = arith.constant 9.99999974E-6 : f32
    %154 = vector.broadcast %cst_62 : f32 to vector<1x16x1xf32>
    %155 = arith.addf %153, %154 : vector<1x16x1xf32>
    %156 = math.rsqrt %155 : vector<1x16x1xf32>
    %157 = vector.shape_cast %132 : vector<16x1xf32> to vector<1x16x1xf32>
    %158 = arith.mulf %157, %156 : vector<1x16x1xf32>
    %159 = arith.mulf %142, %158 : vector<1x16x1xf32>
    %160 = vector.shape_cast %134 : vector<16x1xf32> to vector<1x16x1xf32>
    %161 = arith.subf %160, %159 : vector<1x16x1xf32>
    %162 = vector.broadcast %158 : vector<1x16x1xf32> to vector<2x16x128xf32>
    %163 = arith.mulf %130, %162 : vector<2x16x128xf32>
    %164 = vector.broadcast %161 : vector<1x16x1xf32> to vector<2x16x128xf32>
    %165 = arith.addf %163, %164 : vector<2x16x128xf32>
    %cst_63 = arith.constant 0.707106769 : f32
    %166 = vector.broadcast %cst_63 : f32 to vector<2x16x128xf32>
    %167 = arith.mulf %165, %166 : vector<2x16x128xf32>
    %168 = math.absf %167 : vector<2x16x128xf32>
    %cst_64 = arith.constant 0.327591091 : f32
    %169 = vector.broadcast %cst_64 : f32 to vector<2x16x128xf32>
    %170 = arith.mulf %169, %168 : vector<2x16x128xf32>
    %cst_65 = arith.constant 1.000000e+00 : f32
    %171 = vector.broadcast %cst_65 : f32 to vector<2x16x128xf32>
    %172 = arith.addf %171, %170 : vector<2x16x128xf32>
    %cst_66 = arith.constant 1.000000e+00 : f32
    %173 = vector.broadcast %cst_66 : f32 to vector<2x16x128xf32>
    %174 = arith.divf %173, %172 : vector<2x16x128xf32>
    %cst_67 = arith.constant 1.06140542 : f32
    %175 = vector.broadcast %cst_67 : f32 to vector<2x16x128xf32>
    %176 = arith.mulf %175, %174 : vector<2x16x128xf32>
    %cst_68 = arith.constant 1.45315206 : f32
    %177 = vector.broadcast %cst_68 : f32 to vector<2x16x128xf32>
    %178 = arith.subf %176, %177 : vector<2x16x128xf32>
    %179 = arith.mulf %178, %174 : vector<2x16x128xf32>
    %cst_69 = arith.constant 1.42141378 : f32
    %180 = vector.broadcast %cst_69 : f32 to vector<2x16x128xf32>
    %181 = arith.addf %179, %180 : vector<2x16x128xf32>
    %182 = arith.mulf %181, %174 : vector<2x16x128xf32>
    %cst_70 = arith.constant 0.284496725 : f32
    %183 = vector.broadcast %cst_70 : f32 to vector<2x16x128xf32>
    %184 = arith.subf %182, %183 : vector<2x16x128xf32>
    %185 = arith.mulf %184, %174 : vector<2x16x128xf32>
    %cst_71 = arith.constant 0.254829586 : f32
    %186 = vector.broadcast %cst_71 : f32 to vector<2x16x128xf32>
    %187 = arith.addf %185, %186 : vector<2x16x128xf32>
    %188 = arith.mulf %187, %174 : vector<2x16x128xf32>
    %cst_72 = arith.constant 0.000000e+00 : f32
    %189 = vector.broadcast %cst_72 : f32 to vector<2x16x128xf32>
    %190 = arith.subf %189, %168 : vector<2x16x128xf32>
    %191 = arith.mulf %190, %168 : vector<2x16x128xf32>
    %192 = math.exp %191 : vector<2x16x128xf32>
    %193 = arith.mulf %188, %192 : vector<2x16x128xf32>
    %cst_73 = arith.constant 0.000000e+00 : f32
    %194 = vector.broadcast %cst_73 : f32 to vector<2x16x128xf32>
    %195 = arith.cmpf oge, %165, %194 : vector<2x16x128xf32>
    %cst_74 = arith.constant 2.000000e+00 : f32
    %196 = vector.broadcast %cst_74 : f32 to vector<2x16x128xf32>
    %197 = arith.subf %196, %193 : vector<2x16x128xf32>
    %198 = arith.select %195, %197, %193 : vector<2x16x128xi1>, vector<2x16x128xf32>
    %cst_75 = arith.constant 5.000000e-01 : f32
    %199 = vector.broadcast %cst_75 : f32 to vector<2x16x128xf32>
    %200 = arith.mulf %199, %165 : vector<2x16x128xf32>
    %201 = arith.mulf %200, %198 : vector<2x16x128xf32>
    %c1_i32_76 = arith.constant 1 : i32
    %202 = tpu.dynamic_rotate %201 by %c1_i32_76 dim 2 : vector<2x16x128xf32>, i32 -> vector<2x16x128xf32>
    %cst_77 = arith.constant 0.000000e+00 : f32
    %203 = vector.shape_cast %3 : vector<1x1x128xi1> to vector<1x1x128xi1>
    %204 = vector.broadcast %203 : vector<1x1x128xi1> to vector<2x16x128xi1>
    %205 = vector.broadcast %cst_77 : f32 to vector<2x16x128xf32>
    %206 = arith.select %204, %202, %205 : vector<2x16x128xi1>, vector<2x16x128xf32>
    %c127_i32_78 = arith.constant 127 : i32
    %207 = tpu.dynamic_rotate %201 by %c127_i32_78 dim 2 : vector<2x16x128xf32>, i32 -> vector<2x16x128xf32>
    %cst_79 = arith.constant 0.000000e+00 : f32
    %208 = vector.shape_cast %5 : vector<1x1x128xi1> to vector<1x1x128xi1>
    %209 = vector.broadcast %208 : vector<1x1x128xi1> to vector<2x16x128xi1>
    %210 = vector.broadcast %cst_79 : f32 to vector<2x16x128xf32>
    %211 = arith.select %209, %207, %210 : vector<2x16x128xi1>, vector<2x16x128xf32>
    %c7 = arith.constant 7 : index
    %c0_80 = arith.constant 0 : index
    %c0_81 = arith.constant 0 : index
    %212 = vector.load %arg1[%c7, %c0_80, %c0_81] : memref<16x16x1xf32, #tpu.memory_space<vmem>>, vector<1x16x1xf32>
    %213 = vector.shape_cast %212 : vector<1x16x1xf32> to vector<16x1xf32>
    %214 = vector.shape_cast %213 : vector<16x1xf32> to vector<1x16x1xf32>
    %215 = vector.broadcast %214 : vector<1x16x1xf32> to vector<2x16x128xf32>
    %216 = arith.mulf %206, %215 : vector<2x16x128xf32>
    %c8 = arith.constant 8 : index
    %c0_82 = arith.constant 0 : index
    %c0_83 = arith.constant 0 : index
    %217 = vector.load %arg1[%c8, %c0_82, %c0_83] : memref<16x16x1xf32, #tpu.memory_space<vmem>>, vector<1x16x1xf32>
    %218 = vector.shape_cast %217 : vector<1x16x1xf32> to vector<16x1xf32>
    %219 = vector.shape_cast %218 : vector<16x1xf32> to vector<1x16x1xf32>
    %220 = vector.broadcast %219 : vector<1x16x1xf32> to vector<2x16x128xf32>
    %221 = arith.mulf %201, %220 : vector<2x16x128xf32>
    %222 = arith.addf %216, %221 : vector<2x16x128xf32>
    %c9 = arith.constant 9 : index
    %c0_84 = arith.constant 0 : index
    %c0_85 = arith.constant 0 : index
    %223 = vector.load %arg1[%c9, %c0_84, %c0_85] : memref<16x16x1xf32, #tpu.memory_space<vmem>>, vector<1x16x1xf32>
    %224 = vector.shape_cast %223 : vector<1x16x1xf32> to vector<16x1xf32>
    %225 = vector.shape_cast %224 : vector<16x1xf32> to vector<1x16x1xf32>
    %226 = vector.broadcast %225 : vector<1x16x1xf32> to vector<2x16x128xf32>
    %227 = arith.mulf %211, %226 : vector<2x16x128xf32>
    %228 = arith.addf %222, %227 : vector<2x16x128xf32>
    %c10 = arith.constant 10 : index
    %c0_86 = arith.constant 0 : index
    %c0_87 = arith.constant 0 : index
    %229 = vector.load %arg1[%c10, %c0_86, %c0_87] : memref<16x16x1xf32, #tpu.memory_space<vmem>>, vector<1x16x1xf32>
    %230 = vector.shape_cast %229 : vector<1x16x1xf32> to vector<16x1xf32>
    %231 = vector.shape_cast %230 : vector<16x1xf32> to vector<1x16x1xf32>
    %232 = vector.broadcast %231 : vector<1x16x1xf32> to vector<2x16x128xf32>
    %233 = arith.addf %228, %232 : vector<2x16x128xf32>
    %c1_88 = arith.constant 1 : index
    %c0_89 = arith.constant 0 : index
    %c0_90 = arith.constant 0 : index
    %234 = vector.load %arg2[%c1_88, %c0_89, %c0_90] : memref<4x16x16xf32, #tpu.memory_space<vmem>>, vector<1x16x16xf32>
    %235 = vector.shape_cast %234 : vector<1x16x16xf32> to vector<16x16xf32>
    %c11 = arith.constant 11 : index
    %c0_91 = arith.constant 0 : index
    %c0_92 = arith.constant 0 : index
    %236 = vector.load %arg1[%c11, %c0_91, %c0_92] : memref<16x16x1xf32, #tpu.memory_space<vmem>>, vector<1x16x1xf32>
    %237 = vector.shape_cast %236 : vector<1x16x1xf32> to vector<16x1xf32>
    %238 = vector.extract_strided_slice %233 {offsets = [0, 0, 0], sizes = [1, 16, 128], strides = [1, 1, 1]} : vector<2x16x128xf32> to vector<1x16x128xf32>
    %239 = vector.shape_cast %238 : vector<1x16x128xf32> to vector<16x128xf32>
    %cst_93 = arith.constant dense<0.000000e+00> : vector<16x128xf32>
    %240 = tpu.matmul %235, %239, %cst_93 {dimension_numbers = #tpu.dot_dimension_numbers<[1], [0], [0], [1], [0, 0, 1, 1], [], []>} : vector<16x16xf32>, vector<16x128xf32>, vector<16x128xf32> -> vector<16x128xf32>
    %241 = vector.extract_strided_slice %233 {offsets = [1, 0, 0], sizes = [1, 16, 128], strides = [1, 1, 1]} : vector<2x16x128xf32> to vector<1x16x128xf32>
    %242 = vector.shape_cast %241 : vector<1x16x128xf32> to vector<16x128xf32>
    %cst_94 = arith.constant dense<0.000000e+00> : vector<16x128xf32>
    %243 = tpu.matmul %235, %242, %cst_94 {dimension_numbers = #tpu.dot_dimension_numbers<[1], [0], [0], [1], [0, 0, 1, 1], [], []>} : vector<16x16xf32>, vector<16x128xf32>, vector<16x128xf32> -> vector<16x128xf32>
    %244 = vector.shape_cast %240 : vector<16x128xf32> to vector<1x16x128xf32>
    %245 = vector.shape_cast %243 : vector<16x128xf32> to vector<1x16x128xf32>
    %246 = tpu.concatenate %244, %245 in 0 : vector<1x16x128xf32>, vector<1x16x128xf32> -> vector<2x16x128xf32>
    %247 = vector.shape_cast %237 : vector<16x1xf32> to vector<1x16x1xf32>
    %248 = vector.broadcast %247 : vector<1x16x1xf32> to vector<2x16x128xf32>
    %249 = arith.addf %246, %248 : vector<2x16x128xf32>
    %c12 = arith.constant 12 : index
    %c0_95 = arith.constant 0 : index
    %c0_96 = arith.constant 0 : index
    %250 = vector.load %arg1[%c12, %c0_95, %c0_96] : memref<16x16x1xf32, #tpu.memory_space<vmem>>, vector<1x16x1xf32>
    %251 = vector.shape_cast %250 : vector<1x16x1xf32> to vector<16x1xf32>
    %c13 = arith.constant 13 : index
    %c0_97 = arith.constant 0 : index
    %c0_98 = arith.constant 0 : index
    %252 = vector.load %arg1[%c13, %c0_97, %c0_98] : memref<16x16x1xf32, #tpu.memory_space<vmem>>, vector<1x16x1xf32>
    %253 = vector.shape_cast %252 : vector<1x16x1xf32> to vector<16x1xf32>
    %cst_99 = arith.constant dense<0.000000e+00> : vector<2x16xf32>
    %254 = vector.multi_reduction <add>, %249, %cst_99 [2] : vector<2x16x128xf32> to vector<2x16xf32>
    %255 = vector.shape_cast %254 : vector<2x16xf32> to vector<2x16x1xf32>
    %cst_100 = arith.constant 1.280000e+02 : f32
    %256 = vector.broadcast %cst_100 : f32 to vector<2x16x1xf32>
    %257 = arith.divf %255, %256 : vector<2x16x1xf32>
    %cst_101 = arith.constant dense<0.000000e+00> : vector<16x1xf32>
    %258 = vector.multi_reduction <add>, %257, %cst_101 [0] : vector<2x16x1xf32> to vector<16x1xf32>
    %259 = vector.shape_cast %258 : vector<16x1xf32> to vector<1x16x1xf32>
    %cst_102 = arith.constant 2.000000e+00 : f32
    %260 = vector.broadcast %cst_102 : f32 to vector<1x16x1xf32>
    %261 = arith.divf %259, %260 : vector<1x16x1xf32>
    %262 = vector.broadcast %261 : vector<1x16x1xf32> to vector<2x16x128xf32>
    %263 = arith.subf %249, %262 : vector<2x16x128xf32>
    %264 = arith.mulf %263, %263 : vector<2x16x128xf32>
    %cst_103 = arith.constant dense<0.000000e+00> : vector<2x16xf32>
    %265 = vector.multi_reduction <add>, %264, %cst_103 [2] : vector<2x16x128xf32> to vector<2x16xf32>
    %266 = vector.shape_cast %265 : vector<2x16xf32> to vector<2x16x1xf32>
    %cst_104 = arith.constant 1.280000e+02 : f32
    %267 = vector.broadcast %cst_104 : f32 to vector<2x16x1xf32>
    %268 = arith.divf %266, %267 : vector<2x16x1xf32>
    %cst_105 = arith.constant dense<0.000000e+00> : vector<16x1xf32>
    %269 = vector.multi_reduction <add>, %268, %cst_105 [0] : vector<2x16x1xf32> to vector<16x1xf32>
    %270 = vector.shape_cast %269 : vector<16x1xf32> to vector<1x16x1xf32>
    %cst_106 = arith.constant 2.000000e+00 : f32
    %271 = vector.broadcast %cst_106 : f32 to vector<1x16x1xf32>
    %272 = arith.divf %270, %271 : vector<1x16x1xf32>
    %cst_107 = arith.constant 9.99999974E-6 : f32
    %273 = vector.broadcast %cst_107 : f32 to vector<1x16x1xf32>
    %274 = arith.addf %272, %273 : vector<1x16x1xf32>
    %275 = math.rsqrt %274 : vector<1x16x1xf32>
    %276 = vector.shape_cast %251 : vector<16x1xf32> to vector<1x16x1xf32>
    %277 = arith.mulf %276, %275 : vector<1x16x1xf32>
    %278 = arith.mulf %261, %277 : vector<1x16x1xf32>
    %279 = vector.shape_cast %253 : vector<16x1xf32> to vector<1x16x1xf32>
    %280 = arith.subf %279, %278 : vector<1x16x1xf32>
    %281 = vector.broadcast %277 : vector<1x16x1xf32> to vector<2x16x128xf32>
    %282 = arith.mulf %249, %281 : vector<2x16x128xf32>
    %283 = vector.broadcast %280 : vector<1x16x1xf32> to vector<2x16x128xf32>
    %284 = arith.addf %282, %283 : vector<2x16x128xf32>
    %285 = vector.broadcast %82 : vector<2x16x1xf32> to vector<2x16x128xf32>
    %286 = arith.mulf %284, %285 : vector<2x16x128xf32>
    %287 = arith.addf %0, %286 : vector<2x16x128xf32>
    %c0_108 = arith.constant 0 : index
    %c0_109 = arith.constant 0 : index
    %c0_110 = arith.constant 0 : index
    %288 = vector.load %arg3[%c0_108, %c0_109, %c0_110] : memref<2x16x128xf32, #tpu.memory_space<vmem>>, vector<2x16x128xf32>
    tpu.vector_store %arg3[%c0_108, %c0_109, %c0_110], %287 {strides = array<i32>} : memref<2x16x128xf32, #tpu.memory_space<vmem>>, vector<2x16x128xf32>,
    return
  }
}

</mosaic_0001>

<bundles_post_ra>
// kernel: residual_block.1
= control target key start
LH: loop header
LB: loop body
LE: loop exit
PB: predicated region body
PF: predicated region fallthrough
CT: control target
= control target key end

     0   :  { %s2085_s0 = inlined_call_operand.vmem [shape: f32[2,16,128], index: 0, kind: input, shape index: {}]   ;;  %s2086_s1 = inlined_call_operand.vmem [shape: f32[16,16,1], index: 1, kind: input, shape index: {}]   ;;  %s2087_s2 = inlined_call_operand.vmem [shape: f32[4,16,16], index: 2, kind: input, shape index: {}]   ;;  %s2088_s3 = inlined_call_operand.hbm [shape: f32[2,16,128], index: 3, kind: output, shape index: {}]  }
   0x1   :  { %v1677_v0 = vld [vmem:[%s2085_s0 + $0x10] sm:$0xff]  ;;  %v1682_v1 = vld [vmem:[%s2085_s0] sm:$0xff] }
   0x2   :  { %27 = vadd.xlane.f32.xlu1 %v1677_v0  ;;  %23 = vadd.xlane.f32.xlu0 %v1682_v1 }
   0x3   :  { %8 = vsyncpa [#allocation3], 0  ;;  %v1689_v2 = vld [vmem:[%s2085_s0 + $0x18] sm:$0xff]  ;;  %v1694_v3 = vld [vmem:[%s2085_s0 + $0x8] sm:$0xff]  ;;  %vm42_vm0 = vcmask 130048   ;;  %v1648_v6 = vmov 0   ;;  %v19_v62 = vlaneseq }
   0x4   :  { %v1364_v4 = vld [vmem:[%s2087_s2 + $0x20] sm:$0xff]  ;;  %v522_v5 = vld [vmem:[%s2086_s1 + $0x8] sm:$0xff]  ;;  %1563 = vset.pattern.permute.xlu1 %v1648_v6  ;;  %1562 = vset.pattern.permute.xlu0 %v1648_v6  ;;  %v1392_v8 = vld [vmem:[%s2086_s1 + $0x10] sm:$0xff]  ;;  %s1649_s28 = smov 1   ;;  %s1650_s8 = smov 127  }
   0x5   :  { %1472 = vmatprep.mubr.msk.f32.mxu0 %vm42_vm0, %v1364_v4  ;;  %1479 = vmatprep.mubr.msk.f32.mxu1 %vm42_vm0, %v1364_v4  ;;  %v521_v7 = vld [vmem:[%s2086_s1] sm:$0xff]  ;;  %v1393_v9 = vld [vmem:[%s2086_s1 + $0x18] sm:$0xff]  ;;  %v1395_v12 = vld [vmem:[%s2086_s1 + $0x28] sm:$0xff] }
   0x6   :  { %29 = vadd.xlane.f32.xlu1 %v1689_v2  ;;  %25 = vadd.xlane.f32.xlu0 %v1694_v3  ;;  %v1397_v10 = vld [vmem:[%s2086_s1 + $0x38] sm:$0xff]  ;;  %v1394_v11 = vld [vmem:[%s2086_s1 + $0x20] sm:$0xff]  ;;  %v1399_v13 = vld [vmem:[%s2086_s1 + $0x48] sm:$0xff] }
   0x7   :  { %v1396_v14 = vld [vmem:[%s2086_s1 + $0x30] sm:$0xff]  ;;  %v1398_v15 = vld [vmem:[%s2086_s1 + $0x40] sm:$0xff]  ;;  %v1365_v26 = vld [vmem:[%s2087_s2 + $0x28] sm:$0xff] }
   0x8   :  { %v1380_v27 = vld [vmem:[%s2087_s2 + $0x30] sm:$0xff]  ;;  %v1367_v32 = vld [vmem:[%s2086_s1 + $0xe8] sm:$0xff]  ;;  %v1366_v34 = vld [vmem:[%s2086_s1 + $0xe0] sm:$0xff] }
  0x17   :  { %530 = vperm.xlu1 %1563, %v522_v5  }
  0x1b   :  { %542 = vperm.xlu1 %1563, %v1392_v8  }
  0x1c   :  { %525 = vperm.xlu0 %1562, %v521_v7   ;;  %v1791_v7 = vand.u32 127, %v19_v62 }
  0x1e   :  { %vm21_vm1 = vcmp.gt.s32.totalorder %v1791_v7, 0  ;;  %vm22_vm2 = vcmp.lt.s32.totalorder %v1791_v7, 127 }
  0x1f   :  { %547 = vperm.xlu1 %1563, %v1393_v9  }
  0x20   :  { %499 = vrot.lane.b32.xlu0 %v1689_v2, %s1649_s28 }
  0x23   :  { %563 = vperm.xlu1 %1563, %v1394_v11  }
  0x24   :  { %589 = vperm.xlu0 %1562, %v1397_v10  }
  0x27   :  { %568 = vperm.xlu1 %1563, %v1395_v12  }
  0x28   :  { %509 = vrot.lane.b32.xlu0 %v1694_v3, %s1650_s8 }
  0x2b   :  { %493 = vrot.lane.b32.xlu1 %v1682_v1, %s1649_s28 }
  0x2c   :  { %513 = vrot.lane.b32.xlu0 %v1689_v2, %s1650_s8 }
  0x2f   :  { %495 = vrot.lane.b32.xlu1 %v1694_v3, %s1649_s28 }
  0x30   :  { %764 = vperm.xlu0 %1562, %v1399_v13  }
  0x33   :  { %497 = vrot.lane.b32.xlu1 %v1677_v0, %s1649_s28 }
  0x37   :  { %584 = vperm.xlu1 %1563, %v1396_v14  }
  0x3b   :  { %507 = vrot.lane.b32.xlu1 %v1682_v1, %s1650_s8 }
  0x3f   :  { %511 = vrot.lane.b32.xlu1 %v1677_v0, %s1650_s8 }
  0x43   :  { %759 = vperm.xlu1 %1563, %v1398_v15  }
  0x8f   :  { %v28_v16 = vpop.xlane.xlu1 %27  ;;  %v24_v17 = vpop.xlane.xlu0 %23 }
  0x90   :  { %v34_v18 = vmul.f32 0.0078125, %v28_v16  ;;  %v32_v21 = vmul.f32 0.0078125, %v24_v17 }
  0x93   :  { %v30_v19 = vpop.xlane.xlu1 %29  ;;  %v26_v20 = vpop.xlane.xlu0 %25 }
  0x94   :  { %v35_v22 = vmul.f32 0.0078125, %v30_v19  ;;  %v33_v23 = vmul.f32 0.0078125, %v26_v20 }
  0x96   :  { %v1524_v24 = vpack.c.bf16 %v33_v23, %v32_v21  ;;  %v1528_v25 = vpack.c.bf16 %v35_v22, %v34_v18 }
  0x97   :  { %v1759_v28 = vpop.permute.xlu1 %530 }
  0x98   :  { %1525 = vmatprep.subr.bf16.mxu0 %v1524_v24  ;;  %1529 = vmatprep.subr.bf16.mxu1 %v1528_v25 }
  0x99   :  { %1527 = vmatpush3.bf16.msra.mxu0 %v1524_v24  ;;  %1531 = vmatpush3.bf16.msra.mxu1 %v1528_v25 }
  0x9b   :  { %v1761_v29 = vpop.permute.xlu1 %542  ;;  %v1789_v60 = vpop.permute.xlu0 %525 }
  0x9c   :  { %1473 = vmatmul.mubr.msk.f32.vlgmr.msra.gmra.mrb[0].mxu0 %vm42_vm0, %v1365_v26  ;;  %1480 = vmatmul.mubr.msk.f32.vlgmr.msra.gmra.mrb[0].mxu1 %vm42_vm0, %v1365_v26 }
  0x9d   :  { %1486 = vmatprep.mubr.msk.f32.mxu0 %vm42_vm0, %v1380_v27  ;;  %1493 = vmatprep.mubr.msk.f32.mxu1 %vm42_vm0, %v1380_v27 }
  0x9f   :  { %v1763_v30 = vpop.permute.xlu1 %547  ;;  %v500_v5 = vpop.permute.xlu0 %499 }
  0xa0   :  { %v506_v27 = vsel %vm21_vm1, %v500_v5, 0.0 }
  0xa3   :  { %v1765_v31 = vpop.permute.xlu1 %563  ;;  %v1802_v17 = vpop.permute.xlu0 %589 }
  0xa7   :  { %v1770_v33 = vpop.permute.xlu1 %568 }
  0xab   :  { %v1786_v46 = vpop.permute.xlu1 %493 }
  0xaf   :  { %v496_v58 = vpop.permute.xlu1 %495 }
  0xb3   :  { %v498_v63 = vpop.permute.xlu1 %497 }
  0xb7   :  { %v1798_v14 = vpop.permute.xlu1 %584 }
 0x16f   :  { %v1474_v35 = vpop.f32.mrb[0].mxu0  ;;  %v1481_v36 = vpop.f32.mrb[0].mxu1 }
 0x170   :  { %v1775_v37 = vadd.f32 %v1474_v35, %v1367_v32  ;;  %v1777_v38 = vadd.f32 %v1481_v36, %v1367_v32  ;;  %v115_v39 = vpop.f32.mrb[1].mxu0  ;;  %v190_v40 = vpop.f32.mrb[1].mxu1  ;;  %v550_v35 = vmul.f32 %v1761_v29, %v1682_v1  ;;  %v503_v1 = vsel %vm21_vm1, %v1786_v46, 0.0 }
 0x171   :  { %v1779_v41 = vadd.f32 %v1366_v34, %v115_v39  ;;  %v1781_v42 = vadd.f32 %v1366_v34, %v190_v40 }
 0x172   :  { %v204_v43 = vmul.f32 0.70710677, %v1775_v37  ;;  %v206_v44 = vmul.f32 0.70710677, %v1777_v38  ;;  %vm284_vm3 = vcmp.ge.f32.partialorder %v1775_v37, 0.0  ;;  %vm286_vm4 = vcmp.ge.f32.partialorder %v1777_v38, 0.0 }
 0x173   :  { %v203_v45 = vmul.f32 0.70710677, %v1779_v41  ;;  %v205_v50 = vmul.f32 0.70710677, %v1781_v42  ;;  %vm283_vm5 = vcmp.ge.f32.partialorder %v1779_v41, 0.0  ;;  %vm285_vm6 = vcmp.ge.f32.partialorder %v1781_v42, 0.0 }
 0x174   :  { %v208_v47 = vand.u32 2147483647, %v204_v43  ;;  %v210_v48 = vand.u32 2147483647, %v206_v44  ;;  %v552_v43 = vmul.f32 %v1761_v29, %v1677_v0  ;;  %v508_v44 = vpop.permute.xlu1 %507  ;;  %v504_v29 = vsel %vm21_vm1, %v496_v58, 0.0 }
 0x175   :  { %v207_v49 = vand.u32 2147483647, %v203_v45  ;;  %v209_v54 = vand.u32 2147483647, %v205_v50  ;;  %v534_v5 = vmul.f32 %v1759_v28, %v504_v29 }
 0x176   :  { %v212_v51 = vmul.f32 0.3275911, %v208_v47  ;;  %v214_v52 = vmul.f32 0.3275911, %v210_v48  ;;  %v264_v4 = vsub.f32 0.0, %v208_v47  ;;  %v266_v6 = vsub.f32 0.0, %v210_v48 }
 0x177   :  { %v211_v53 = vmul.f32 0.3275911, %v207_v49  ;;  %v213_v57 = vmul.f32 0.3275911, %v209_v54  ;;  %v263_v10 = vsub.f32 0.0, %v207_v49  ;;  %v265_v15 = vsub.f32 0.0, %v209_v54 }
 0x178   :  { %v216_v55 = vadd.f32 1.0, %v212_v51  ;;  %v218_v56 = vadd.f32 1.0, %v214_v52  ;;  %v268_v9 = vmul.f32 %v264_v4, %v208_v47  ;;  %v270_v12 = vmul.f32 %v266_v6, %v210_v48  ;;  %v510_v48 = vpop.permute.xlu0 %509 }
 0x179   :  { %v215_v59 = vadd.f32 1.0, %v211_v53  ;;  %v217_v61 = vadd.f32 1.0, %v213_v57  ;;  %v267_v21 = vmul.f32 %v263_v10, %v207_v49  ;;  %v269_v32 = vmul.f32 %v265_v15, %v209_v54 }
 0x17a   :  { %1564 = vrcp.f32 %v216_v55  ;;  %v273_v20 = vmul.f32 1.442695, %v268_v9  ;;  %v277_v23 = vmul.f32 1.442695, %v270_v12  ;;  %v536_v52 = vmul.f32 %v1759_v28, %v506_v27  ;;  %v512_v9 = vpop.permute.xlu1 %511 }
 0x17b   :  { %1566 = vrcp.f32 %v218_v56  ;;  %v271_v45 = vmul.f32 1.442695, %v267_v21  ;;  %v275_v53 = vmul.f32 1.442695, %v269_v32  ;;  %v551_v57 = vmul.f32 %v1763_v30, %v1694_v3 }
 0x17c   :  { %1568 = vrcp.f32 %v215_v59  ;;  %v518_v59 = vsel %vm22_vm2, %v510_v48, 0.0  ;;  %v533_v6 = vmul.f32 %v1789_v60, %v503_v1  ;;  %v553_v10 = vmul.f32 %v1763_v30, %v1689_v2  ;;  %v514_v12 = vpop.permute.xlu0 %513 }
 0x17d   :  { %1570 = vrcp.f32 %v217_v61  ;;  %v505_v61 = vsel %vm21_vm1, %v498_v63, 0.0  ;;  %v572_v28 = vmul.f32 %v1770_v33, %v518_v59  ;;  %v519_v21 = vsel %vm22_vm2, %v512_v9, 0.0 }
 0x17e   :  { %1572 = vpow2.f32 %v273_v20  ;;  %v295_v59 = vmul.f32 0.5, %v1779_v41 }
 0x17f   :  { %1574 = vpow2.f32 %v277_v23 }
 0x180   :  { %1576 = vpow2.f32 %v271_v45  ;;  %v557_v45 = vadd.f32 %v553_v10, %v536_v52 }
 0x181   :  { %1578 = vpow2.f32 %v275_v53 }
 0x184   :  { %v1793_v8 = vpop.eup %1564 }
 0x185   :  { %v1795_v11 = vpop.eup %1566  ;;  %v228_v13 = vmul.f32 1.0614054, %v1793_v8 }
 0x186   :  { %v230_v16 = vmul.f32 1.0614054, %v1795_v11  ;;  %v1804_v19 = vpop.eup %1568 }
 0x187   :  { %v1373_v18 = vadd.f32 -1.4531521, %v228_v13  ;;  %v227_v24 = vmul.f32 1.0614054, %v1804_v19  ;;  %v1808_v26 = vpop.eup %1570 }
 0x188   :  { %v1375_v22 = vadd.f32 -1.4531521, %v230_v16  ;;  %v229_v40 = vmul.f32 1.0614054, %v1808_v26  ;;  %v535_v16 = vmul.f32 %v1789_v60, %v505_v61  ;;  %v1573_v23 = vpop.eup %1572  ;;  %v520_v60 = vsel %vm22_vm2, %v514_v12, 0.0 }
 0x189   :  { %v236_v25 = vmul.f32 %v1793_v8, %v1373_v18  ;;  %v1372_v36 = vadd.f32 -1.4531521, %v227_v24  ;;  %v517_v18 = vsel %vm22_vm2, %v508_v44, 0.0  ;;  %v555_v24 = vadd.f32 %v551_v57, %v534_v5  ;;  %v1575_v32 = vpop.eup %1574 }
 0x18a   :  { %v238_v34 = vmul.f32 %v1795_v11, %v1375_v22  ;;  %v1374_v51 = vadd.f32 -1.4531521, %v229_v40  ;;  %v556_v44 = vadd.f32 %v552_v43, %v535_v16  ;;  %v574_v48 = vmul.f32 %v1770_v33, %v520_v60  ;;  %v1894_v16 = vld [vmem:[%s2086_s1 + $0xf8] sm:$0xff] }
 0x18b   :  { %v240_v39 = vadd.f32 1.4214138, %v236_v25  ;;  %v235_v49 = vmul.f32 %v1804_v19, %v1372_v36  ;;  %v554_v25 = vadd.f32 %v550_v35, %v533_v6  ;;  %v298_v57 = vmul.f32 0.5, %v1777_v38 }
 0x18c   :  { %v242_v47 = vadd.f32 1.4214138, %v238_v34  ;;  %v237_v56 = vmul.f32 %v1808_v26, %v1374_v51  ;;  %v571_v34 = vmul.f32 %v1765_v31, %v517_v18  ;;  %v1577_v51 = vpop.eup %1576 }
 0x18d   :  { %v244_v50 = vmul.f32 %v1793_v8, %v240_v39  ;;  %v239_v54 = vadd.f32 1.4214138, %v235_v49  ;;  %v1579_v52 = vpop.eup %1578 }
 0x18e   :  { %v246_v0 = vmul.f32 %v1795_v11, %v242_v47  ;;  %v241_v58 = vadd.f32 1.4214138, %v237_v56  ;;  %v575_v53 = vadd.f32 %v571_v34, %v554_v25 }
 0x18f   :  { %v1377_v55 = vadd.f32 -0.28449672, %v244_v50  ;;  %v243_v62 = vmul.f32 %v1804_v19, %v239_v54  ;;  %v578_v54 = vadd.f32 %v574_v48, %v557_v45 }
 0x190   :  { %v1379_v46 = vadd.f32 -0.28449672, %v246_v0  ;;  %v245_v63 = vmul.f32 %v1808_v26, %v241_v58  ;;  %v592_v61 = vadd.f32 %v1798_v14, %v575_v53 }
 0x191   :  { %v252_v4 = vmul.f32 %v1793_v8, %v1377_v55  ;;  %v1376_v13 = vadd.f32 -0.28449672, %v243_v62  ;;  %v595_v9 = vadd.f32 %v1802_v17, %v578_v54 }
 0x192   :  { %v254_v3 = vmul.f32 %v1795_v11, %v1379_v46  ;;  %v1378_v30 = vadd.f32 -0.28449672, %v245_v63 }
 0x193   :  { %v256_v15 = vadd.f32 0.2548296, %v252_v4  ;;  %v251_v22 = vmul.f32 %v1804_v19, %v1376_v13  ;;  %v297_v4 = vmul.f32 0.5, %v1781_v42  ;;  %v1381_v13 = vld [vmem:[%s2087_s2 + $0x38] sm:$0xff] }
 0x194   :  { %v258_v20 = vadd.f32 0.2548296, %v254_v3  ;;  %v253_v40 = vmul.f32 %v1808_v26, %v1378_v30 }
 0x195   :  { %v260_v2 = vmul.f32 %v1793_v8, %v256_v15  ;;  %v255_v36 = vadd.f32 0.2548296, %v251_v22  ;;  %v573_v8 = vmul.f32 %v1765_v31, %v519_v21  ;;  %v296_v31 = vmul.f32 0.5, %v1775_v37  ;;  %v596_v15 = vld [vmem:[%s2087_s2] sm:$0xff]  ;;  %v765_v22 = vpop.permute.xlu0 %764 }
 0x196   :  { %v262_v27 = vmul.f32 %v1795_v11, %v258_v20  ;;  %v257_v50 = vadd.f32 0.2548296, %v253_v40  ;;  %v576_v11 = vadd.f32 %v572_v28, %v555_v24  ;;  %v1899_v28 = vld [vmem:[%s2086_s1 + $0xf0] sm:$0xff] }
 0x197   :  { %v280_v39 = vmul.f32 %v1573_v23, %v260_v2  ;;  %v259_v35 = vmul.f32 %v1804_v19, %v255_v36  ;;  %v577_v33 = vadd.f32 %v573_v8, %v556_v44  ;;  %v760_v23 = vpop.permute.xlu1 %759 }
 0x198   :  { %v282_v47 = vmul.f32 %v1575_v32, %v262_v27  ;;  %v261_v43 = vmul.f32 %v1808_v26, %v257_v50  ;;  %v593_v26 = vadd.f32 %v1802_v17, %v576_v11 }
 0x199   :  { %v288_v49 = vsub.f32 2.0, %v280_v39  ;;  %v279_v0 = vmul.f32 %v1577_v51, %v259_v35  ;;  %v594_v38 = vadd.f32 %v1798_v14, %v577_v33  ;;  %v597_v14 = vld [vmem:[%s2087_s2 + $0x8] sm:$0xff] }
 0x19a   :  { %v290_v1 = vsub.f32 2.0, %v282_v47  ;;  %v281_v55 = vmul.f32 %v1579_v52, %v261_v43  ;;  %v1540_v12 = vpack.c.bf16 %v593_v26, %v592_v61 }
 0x19b   :  { %v292_v29 = vsel %vm284_vm3, %v288_v49, %v280_v39  ;;  %v287_v19 = vsub.f32 2.0, %v279_v0  ;;  %v1544_v42 = vpack.c.bf16 %v595_v9, %v594_v38  ;;  %v1405_v38 = vld [vmem:[%s2086_s1 + $0x58] sm:$0xff] }
 0x19c   :  { %v294_v56 = vsel %vm286_vm4, %v290_v1, %v282_v47  ;;  %v300_v46 = vmul.f32 %v296_v31, %v292_v29  ;;  %v289_v37 = vsub.f32 2.0, %v281_v55 }
 0x19d   :  { %v291_v62 = vsel %vm283_vm5, %v287_v19, %v279_v0  ;;  %v302_v5 = vmul.f32 %v298_v57, %v294_v56 }
 0x19e   :  { %v299_v58 = vmul.f32 %v295_v59, %v291_v62  ;;  %v293_v6 = vsel %vm285_vm6, %v289_v37, %v281_v55 }
 0x19f   :  { %v301_v41 = vmul.f32 %v297_v4, %v293_v6  ;;  %v1404_v6 = vld [vmem:[%s2086_s1 + $0x50] sm:$0xff] }
 0x1a0   :  { %v1532_v3 = vpack.c.bf16 %v300_v46, %v299_v58 }
 0x1a1   :  { %v1536_v10 = vpack.c.bf16 %v302_v5, %v301_v41 }
 0x1a2   :  { %1533 = vmatprep.subr.bf16.mxu0 %v1532_v3 }
 0x1a3   :  { %1535 = vmatpush3.bf16.msra.mxu0 %v1532_v3  ;;  %1537 = vmatprep.subr.bf16.mxu1 %v1536_v10 }
 0x1a4   :  { %1541 = vmatprep.subr.bf16.mxu0 %v1540_v12  ;;  %1539 = vmatpush3.bf16.msra.mxu1 %v1536_v10 }
 0x1a5   :  { %1545 = vmatprep.subr.bf16.mxu1 %v1544_v42 }
 0x1a6   :  { %1487 = vmatmul.mubr.msk.f32.vlgmr.msra.gmra.mrb[2].mxu0 %vm42_vm0, %v1381_v13 }
 0x1a7   :  { %1543 = vmatpush3.bf16.msra.mxu0 %v1540_v12  ;;  %1500 = vmatprep.mubr.msk.f32.mxu0 %vm42_vm0, %v596_v15  ;;  %v1406_v12 = vld [vmem:[%s2086_s1 + $0x60] sm:$0xff] }
 0x1a8   :  { %1494 = vmatmul.mubr.msk.f32.vlgmr.msra.gmra.mrb[2].mxu1 %vm42_vm0, %v1381_v13 }
 0x1a9   :  { %1547 = vmatpush3.bf16.msra.mxu1 %v1544_v42  ;;  %1507 = vmatprep.mubr.msk.f32.mxu1 %vm42_vm0, %v596_v15  ;;  %v1407_v42 = vld [vmem:[%s2086_s1 + $0x68] sm:$0xff] }
 0x1aa   :  { %1501 = vmatmul.mubr.msk.f32.vlgmr.msra.gmra.mrb[4].mxu0 %vm42_vm0, %v597_v14 }
 0x1ac   :  { %1508 = vmatmul.mubr.msk.f32.vlgmr.msra.gmra.mrb[4].mxu1 %vm42_vm0, %v597_v14 }
 0x279   :  { %v1887_v17 = vpop.f32.mrb[2].mxu0 }
 0x27a   :  { %v1889_v63 = vpop.f32.mrb[3].mxu0 }
 0x27b   :  { %v1495_v18 = vpop.f32.mrb[2].mxu1 }
 0x27c   :  { %v1902_v20 = vadd.f32 %v1495_v18, %v1894_v16  ;;  %v456_v21 = vpop.f32.mrb[3].mxu1 }
 0x27d   :  { %v1905_v2 = vadd.f32 %v1899_v28, %v456_v21  ;;  %v1502_v30 = vpop.f32.mrb[4].mxu0  ;;  %v1416_v21 = vld [vmem:[%s2086_s1 + $0x70] sm:$0xff] }
 0x27e   :  { %v1907_v24 = vadd.f32 %v1502_v30, %v765_v22  ;;  %v673_v25 = vpop.f32.mrb[5].mxu0  ;;  %v1418_v30 = vld [vmem:[%s2086_s1 + $0x80] sm:$0xff] }
 0x27f   :  { %v1509_v60 = vpop.f32.mrb[4].mxu1  ;;  %v1909_v27 = vadd.f32 %v760_v23, %v673_v25  ;;  %v1420_v25 = vld [vmem:[%s2086_s1 + $0x90] sm:$0xff] }
 0x280   :  { %v748_v32 = vpop.f32.mrb[5].mxu1  ;;  %779 = vadd.xlane.f32.xlu0 %v1907_v24  ;;  %v1915_v36 = vadd.f32 %v1509_v60, %v765_v22  ;;  %v1417_v22 = vld [vmem:[%s2086_s1 + $0x78] sm:$0xff] }
 0x281   :  { %777 = vadd.xlane.f32.xlu1 %v1909_v27  ;;  %v1913_v34 = vadd.f32 %v760_v23, %v748_v32  ;;  %v1419_v23 = vld [vmem:[%s2086_s1 + $0x88] sm:$0xff]  ;;  %v1421_v60 = vld [vmem:[%s2086_s1 + $0x98] sm:$0xff]  ;;  %v1422_v32 = vld [vmem:[%s2086_s1 + $0xa0] sm:$0xff] }
 0x284   :  { %781 = vadd.xlane.f32.xlu0 %v1913_v34 }
 0x285   :  { %783 = vadd.xlane.f32.xlu1 %v1915_v36 }
 0x30d   :  { %v780_v39 = vpop.xlane.xlu0 %779 }
 0x30e   :  { %v778_v40 = vpop.xlane.xlu1 %777  ;;  %v786_v48 = vmul.f32 0.0078125, %v780_v39  ;;  %v1423_v39 = vld [vmem:[%s2086_s1 + $0xa8] sm:$0xff] }
 0x30f   :  { %v785_v45 = vmul.f32 0.0078125, %v778_v40 }
 0x311   :  { %v782_v44 = vpop.xlane.xlu0 %781 }
 0x312   :  { %v787_v8 = vmul.f32 0.0078125, %v782_v44  ;;  %v784_v47 = vpop.xlane.xlu1 %783 }
 0x313   :  { %v788_v35 = vmul.f32 0.0078125, %v784_v47 }
 0x314   :  { %v789_v49 = vadd.f32 %v787_v8, %v785_v45 }
 0x315   :  { %v790_v50 = vadd.f32 %v788_v35, %v786_v48 }
 0x316   :  { %v792_v51 = vmul.f32 0.5, %v789_v49 }
 0x317   :  { %v793_v11 = vmul.f32 0.5, %v790_v50 }
 0x318   :  { %v794_v1 = vsub.f32 %v1909_v27, %v792_v51  ;;  %v796_v29 = vsub.f32 %v1913_v34, %v792_v51 }
 0x319   :  { %v795_v53 = vsub.f32 %v1907_v24, %v793_v11  ;;  %v797_v52 = vsub.f32 %v1915_v36, %v793_v11 }
 0x31a   :  { %v798_v0 = vmul.f32 %v794_v1, %v794_v1  ;;  %v800_v31 = vmul.f32 %v796_v29, %v796_v29 }
 0x31b   :  { %v799_v43 = vmul.f32 %v795_v53, %v795_v53  ;;  %v801_v33 = vmul.f32 %v797_v52, %v797_v52 }
 0x31c   :  { %802 = vadd.xlane.f32.xlu0 %v798_v0 }
 0x31d   :  { %804 = vadd.xlane.f32.xlu1 %v799_v43 }
 0x320   :  { %806 = vadd.xlane.f32.xlu0 %v800_v31 }
 0x321   :  { %808 = vadd.xlane.f32.xlu1 %v801_v33 }
 0x3a9   :  { %v803_v54 = vpop.xlane.xlu0 %802 }
 0x3aa   :  { %v805_v19 = vpop.xlane.xlu1 %804  ;;  %v810_v56 = vmul.f32 0.0078125, %v803_v54 }
 0x3ab   :  { %v811_v46 = vmul.f32 0.0078125, %v805_v19 }
 0x3ad   :  { %v807_v55 = vpop.xlane.xlu0 %806 }
 0x3ae   :  { %v812_v57 = vmul.f32 0.0078125, %v807_v55  ;;  %v809_v59 = vpop.xlane.xlu1 %808 }
 0x3af   :  { %v813_v61 = vmul.f32 0.0078125, %v809_v59 }
 0x3b0   :  { %v814_v26 = vadd.f32 %v812_v57, %v810_v56 }
 0x3b1   :  { %v815_v62 = vadd.f32 %v813_v61, %v811_v46 }
 0x3b2   :  { %v816_v37 = vmul.f32 0.5, %v814_v26 }
 0x3b3   :  { %v817_v4 = vmul.f32 0.5, %v815_v62 }
 0x3b4   :  { %v818_v58 = vadd.f32 1e-05, %v816_v37 }
 0x3b5   :  { %v819_v5 = vadd.f32 1e-05, %v817_v4 }
 0x3b6   :  { %1580 = vrsqrt.f32 %v818_v58 }
 0x3b7   :  { %1582 = vrsqrt.f32 %v819_v5 }
 0x3c0   :  { %v1581_v9 = vpop.eup %1580 }
 0x3c1   :  { %v1583_v3 = vpop.eup %1582  ;;  %v822_v41 = vmul.f32 %v1581_v9, %v1404_v6 }
 0x3c2   :  { %v823_v10 = vmul.f32 %v1583_v3, %v1405_v38 }
 0x3c3   :  { %830 = vperm.xlu0 %1562, %v822_v41   ;;  %v824_v13 = vmul.f32 %v822_v41, %v792_v51 }
 0x3c4   :  { %835 = vperm.xlu1 %1563, %v823_v10   ;;  %v825_v15 = vmul.f32 %v823_v10, %v793_v11 }
 0x3c5   :  { %v826_v14 = vsub.f32 %v1406_v12, %v824_v13 }
 0x3c6   :  { %v827_v18 = vsub.f32 %v1407_v42, %v825_v15 }
 0x3c8   :  { %844 = vperm.xlu1 %1563, %v826_v14   ;;  %849 = vperm.xlu0 %1562, %v827_v18  }
 0x3cc   :  { %985 = vperm.xlu1 %1563, %v1416_v21   ;;  %990 = vperm.xlu0 %1562, %v1417_v22  }
 0x3d0   :  { %1002 = vperm.xlu1 %1563, %v1418_v30   ;;  %1007 = vperm.xlu0 %1562, %v1419_v23  }
 0x3d4   :  { %1023 = vperm.xlu1 %1563, %v1420_v25   ;;  %1028 = vperm.xlu0 %1562, %v1421_v60  }
 0x3d8   :  { %1044 = vperm.xlu1 %1563, %v1422_v32   ;;  %1049 = vperm.xlu0 %1562, %v1423_v39  }
 0x442   :  { %v831_v40 = vpop.permute.xlu0 %830 }
 0x443   :  { %v836_v44 = vpop.permute.xlu1 %835  ;;  %v838_v45 = vmul.f32 %v831_v40, %v1909_v27  ;;  %v840_v8 = vmul.f32 %v831_v40, %v1913_v34 }
 0x444   :  { %v839_v47 = vmul.f32 %v836_v44, %v1907_v24  ;;  %v841_v48 = vmul.f32 %v836_v44, %v1915_v36 }
 0x447   :  { %v845_v35 = vpop.permute.xlu1 %844  ;;  %v850_v49 = vpop.permute.xlu0 %849 }
 0x448   :  { %v1963_v50 = vadd.f32 %v845_v35, %v838_v45  ;;  %v1965_v51 = vadd.f32 %v845_v35, %v840_v8  ;;  %v1967_v11 = vadd.f32 %v850_v49, %v839_v47  ;;  %v1969_v1 = vadd.f32 %v850_v49, %v841_v48 }
 0x44a   :  { %v856_v53 = vmul.f32 0.70710677, %v1963_v50  ;;  %v858_v27 = vmul.f32 0.70710677, %v1965_v51  ;;  %v857_v34 = vmul.f32 0.70710677, %v1967_v11 }
 0x44b   :  { %v859_v24 = vmul.f32 0.70710677, %v1969_v1  ;;  %vm936_vm7 = vcmp.ge.f32.partialorder %v1963_v50, 0.0  ;;  %vm938_vm8 = vcmp.ge.f32.partialorder %v1965_v51, 0.0  ;;  %vm937_vm9 = vcmp.ge.f32.partialorder %v1967_v11, 0.0 }
 0x44c   :  { %v860_v0 = vand.u32 2147483647, %v856_v53  ;;  %v862_v36 = vand.u32 2147483647, %v858_v27  ;;  %v861_v29 = vand.u32 2147483647, %v857_v34 }
 0x44d   :  { %v863_v43 = vand.u32 2147483647, %v859_v24  ;;  %vm939_vm10 = vcmp.ge.f32.partialorder %v1969_v1, 0.0 }
 0x44e   :  { %v864_v52 = vmul.f32 0.3275911, %v860_v0  ;;  %v866_v31 = vmul.f32 0.3275911, %v862_v36  ;;  %v865_v33 = vmul.f32 0.3275911, %v861_v29 }
 0x44f   :  { %v867_v54 = vmul.f32 0.3275911, %v863_v43  ;;  %v916_v59 = vsub.f32 0.0, %v860_v0  ;;  %v918_v46 = vsub.f32 0.0, %v862_v36  ;;  %v917_v62 = vsub.f32 0.0, %v861_v29 }
 0x450   :  { %v868_v19 = vadd.f32 1.0, %v864_v52  ;;  %v870_v55 = vadd.f32 1.0, %v866_v31  ;;  %v869_v56 = vadd.f32 1.0, %v865_v33  ;;  %v919_v58 = vsub.f32 0.0, %v863_v43 }
 0x451   :  { %v871_v57 = vadd.f32 1.0, %v867_v54  ;;  %v920_v26 = vmul.f32 %v916_v59, %v860_v0  ;;  %v922_v4 = vmul.f32 %v918_v46, %v862_v36  ;;  %v921_v41 = vmul.f32 %v917_v62, %v861_v29 }
 0x452   :  { %1584 = vrcp.f32 %v868_v19  ;;  %v923_v42 = vmul.f32 %v919_v58, %v863_v43 }
 0x453   :  { %1586 = vrcp.f32 %v870_v55  ;;  %v924_v3 = vmul.f32 1.442695, %v920_v26  ;;  %v928_v13 = vmul.f32 1.442695, %v922_v4  ;;  %v926_v23 = vmul.f32 1.442695, %v921_v41 }
 0x454   :  { %1588 = vrcp.f32 %v869_v56  ;;  %v930_v32 = vmul.f32 1.442695, %v923_v42  ;;  %v948_v4 = vmul.f32 0.5, %v1963_v50 }
 0x455   :  { %1590 = vrcp.f32 %v871_v57 }
 0x456   :  { %1592 = vpow2.f32 %v924_v3 }
 0x457   :  { %1594 = vpow2.f32 %v928_v13  ;;  %v950_v13 = vmul.f32 0.5, %v1965_v51 }
 0x458   :  { %1596 = vpow2.f32 %v926_v23 }
 0x459   :  { %1598 = vpow2.f32 %v930_v32 }
 0x45c   :  { %v1585_v61 = vpop.eup %1584 }
 0x45d   :  { %v1587_v37 = vpop.eup %1586  ;;  %v880_v5 = vmul.f32 1.0614054, %v1585_v61 }
 0x45e   :  { %v882_v6 = vmul.f32 1.0614054, %v1587_v37  ;;  %v1589_v9 = vpop.eup %1588 }
 0x45f   :  { %v1408_v38 = vadd.f32 -1.4531521, %v880_v5  ;;  %v1591_v12 = vpop.eup %1590  ;;  %v881_v14 = vmul.f32 1.0614054, %v1589_v9 }
 0x460   :  { %v1410_v10 = vadd.f32 -1.4531521, %v882_v6  ;;  %v883_v21 = vmul.f32 1.0614054, %v1591_v12  ;;  %v1593_v31 = vpop.eup %1592 }
 0x461   :  { %v888_v15 = vmul.f32 %v1585_v61, %v1408_v38  ;;  %v1409_v30 = vadd.f32 -1.4531521, %v881_v14  ;;  %v1595_v19 = vpop.eup %1594 }
 0x462   :  { %v890_v18 = vmul.f32 %v1587_v37, %v1410_v10  ;;  %v1411_v60 = vadd.f32 -1.4531521, %v883_v21  ;;  %v1597_v62 = vpop.eup %1596  ;;  %v1427_v21 = vld [vmem:[%s2086_s1 + $0xb8] sm:$0xff] }
 0x463   :  { %v892_v22 = vadd.f32 1.4214138, %v888_v15  ;;  %v889_v40 = vmul.f32 %v1589_v9, %v1409_v30  ;;  %v1599_v6 = vpop.eup %1598  ;;  %v991_v30 = vpop.permute.xlu0 %990 }
 0x464   :  { %v894_v25 = vadd.f32 1.4214138, %v890_v18  ;;  %v891_v45 = vmul.f32 %v1591_v12, %v1411_v60  ;;  %v951_v18 = vmul.f32 0.5, %v1969_v1  ;;  %v1426_v1 = vld [vmem:[%s2086_s1 + $0xb0] sm:$0xff] }
 0x465   :  { %v896_v39 = vmul.f32 %v1585_v61, %v892_v22  ;;  %v893_v47 = vadd.f32 1.4214138, %v889_v40  ;;  %v986_v22 = vpop.permute.xlu1 %985 }
 0x466   :  { %v898_v44 = vmul.f32 %v1587_v37, %v894_v25  ;;  %v895_v35 = vadd.f32 1.4214138, %v891_v45 }
 0x467   :  { %v1412_v8 = vadd.f32 -0.28449672, %v896_v39  ;;  %v897_v53 = vmul.f32 %v1589_v9, %v893_v47  ;;  %v1008_v25 = vpop.permute.xlu0 %1007 }
 0x468   :  { %v1414_v48 = vadd.f32 -0.28449672, %v898_v44  ;;  %v899_v34 = vmul.f32 %v1591_v12, %v895_v35 }
 0x469   :  { %v904_v49 = vmul.f32 %v1585_v61, %v1412_v8  ;;  %v1413_v0 = vadd.f32 -0.28449672, %v897_v53  ;;  %v1003_v23 = vpop.permute.xlu1 %1002 }
 0x46a   :  { %v906_v27 = vmul.f32 %v1587_v37, %v1414_v48  ;;  %v1415_v29 = vadd.f32 -0.28449672, %v899_v34 }
 0x46b   :  { %v908_v24 = vadd.f32 0.2548296, %v904_v49  ;;  %v905_v52 = vmul.f32 %v1589_v9, %v1413_v0  ;;  %v1029_v32 = vpop.permute.xlu0 %1028 }
 0x46c   :  { %v910_v36 = vadd.f32 0.2548296, %v906_v27  ;;  %v907_v54 = vmul.f32 %v1591_v12, %v1415_v29 }
 0x46d   :  { %v912_v43 = vmul.f32 %v1585_v61, %v908_v24  ;;  %v909_v56 = vadd.f32 0.2548296, %v905_v52  ;;  %v1024_v60 = vpop.permute.xlu1 %1023 }
 0x46e   :  { %v914_v33 = vmul.f32 %v1587_v37, %v910_v36  ;;  %v911_v59 = vadd.f32 0.2548296, %v907_v54 }
 0x46f   :  { %v932_v55 = vmul.f32 %v1593_v31, %v912_v43  ;;  %v913_v26 = vmul.f32 %v1589_v9, %v909_v56  ;;  %v949_v9 = vmul.f32 0.5, %v1967_v11  ;;  %v1424_v11 = vld [vmem:[%s2087_s2 + $0x10] sm:$0xff]  ;;  %v1050_v40 = vpop.permute.xlu0 %1049 }
 0x470   :  { %v934_v57 = vmul.f32 %v1595_v19, %v914_v33  ;;  %v915_v5 = vmul.f32 %v1591_v12, %v911_v59  ;;  %1514 = vmatprep.mubr.msk.f32.mxu0 %vm42_vm0, %v1424_v11  ;;  %1521 = vmatprep.mubr.msk.f32.mxu1 %vm42_vm0, %v1424_v11 }
 0x471   :  { %v940_v46 = vsub.f32 2.0, %v932_v55  ;;  %v933_v38 = vmul.f32 %v1597_v62, %v913_v26  ;;  %v1045_v39 = vpop.permute.xlu1 %1044 }
 0x472   :  { %v942_v58 = vsub.f32 2.0, %v934_v57  ;;  %v935_v3 = vmul.f32 %v1599_v6, %v915_v5 }
 0x473   :  { %v944_v61 = vsel %vm936_vm7, %v940_v46, %v932_v55  ;;  %v941_v10 = vsub.f32 2.0, %v933_v38 }
 0x474   :  { %v952_v37 = vmul.f32 %v948_v4, %v944_v61  ;;  %v946_v41 = vsel %vm938_vm8, %v942_v58, %v934_v57  ;;  %v943_v42 = vsub.f32 2.0, %v935_v3 }
 0x475   :  { %v945_v50 = vsel %vm937_vm9, %v941_v10, %v933_v38  ;;  %v954_v12 = vmul.f32 %v950_v13, %v946_v41 }
 0x476   :  { %956 = vrot.lane.b32.xlu1 %v952_v37, %s1649_s28  ;;  %v953_v15 = vmul.f32 %v949_v9, %v945_v50  ;;  %v947_v14 = vsel %vm939_vm10, %v943_v42, %v935_v3  ;;  %v1010_v53 = vmul.f32 %v1003_v23, %v952_v37 }
 0x477   :  { %v955_v51 = vmul.f32 %v951_v18, %v947_v14  ;;  %v1012_v33 = vmul.f32 %v1003_v23, %v954_v12 }
 0x478   :  { %958 = vrot.lane.b32.xlu0 %v953_v15, %s1649_s28  ;;  %v1011_v52 = vmul.f32 %v1008_v25, %v953_v15 }
 0x479   :  { %v1013_v58 = vmul.f32 %v1008_v25, %v955_v51 }
 0x47a   :  { %960 = vrot.lane.b32.xlu1 %v954_v12, %s1649_s28 }
 0x47c   :  { %962 = vrot.lane.b32.xlu0 %v955_v51, %s1649_s28 }
 0x47e   :  { %968 = vrot.lane.b32.xlu1 %v952_v37, %s1650_s8 }
 0x480   :  { %970 = vrot.lane.b32.xlu0 %v953_v15, %s1650_s8 }
 0x482   :  { %972 = vrot.lane.b32.xlu1 %v954_v12, %s1650_s8  ;;  %v1425_v12 = vld [vmem:[%s2087_s2 + $0x18] sm:$0xff] }
 0x484   :  { %974 = vrot.lane.b32.xlu0 %v955_v51, %s1650_s8 }
 0x486   :  { %1220 = vperm.xlu1 %1563, %v1426_v1  }
 0x488   :  { %1225 = vperm.xlu0 %1562, %v1427_v21  }
 0x4e8   :  { %v957_v44 = vpop.permute.xlu1 %956 }
 0x4e9   :  { %v964_v45 = vsel %vm21_vm1, %v957_v44, 0.0 }
 0x4ea   :  { %v959_v8 = vpop.permute.xlu0 %958  ;;  %v993_v48 = vmul.f32 %v986_v22, %v964_v45 }
 0x4eb   :  { %v965_v35 = vsel %vm21_vm1, %v959_v8, 0.0 }
 0x4ec   :  { %v961_v47 = vpop.permute.xlu1 %960  ;;  %v994_v24 = vmul.f32 %v991_v30, %v965_v35  ;;  %v1014_v36 = vadd.f32 %v1010_v53, %v993_v48 }
 0x4ed   :  { %v966_v49 = vsel %vm21_vm1, %v961_v47, 0.0 }
 0x4ee   :  { %v963_v27 = vpop.permute.xlu0 %962  ;;  %v995_v29 = vmul.f32 %v986_v22, %v966_v49  ;;  %v1015_v56 = vadd.f32 %v1011_v52, %v994_v24 }
 0x4ef   :  { %v967_v31 = vsel %vm21_vm1, %v963_v27, 0.0 }
 0x4f0   :  { %v969_v34 = vpop.permute.xlu1 %968  ;;  %v1016_v46 = vadd.f32 %v1012_v33, %v995_v29  ;;  %v996_v26 = vmul.f32 %v991_v30, %v967_v31 }
 0x4f1   :  { %v976_v0 = vsel %vm22_vm2, %v969_v34, 0.0 }
 0x4f2   :  { %v1031_v43 = vmul.f32 %v1024_v60, %v976_v0  ;;  %v971_v19 = vpop.permute.xlu0 %970  ;;  %v1017_v3 = vadd.f32 %v1013_v58, %v996_v26 }
 0x4f3   :  { %v977_v57 = vsel %vm22_vm2, %v971_v19, 0.0 }
 0x4f4   :  { %v1035_v54 = vadd.f32 %v1031_v43, %v1014_v36  ;;  %v973_v55 = vpop.permute.xlu1 %972  ;;  %v1032_v62 = vmul.f32 %v1029_v32, %v977_v57 }
 0x4f5   :  { %v978_v59 = vsel %vm22_vm2, %v973_v55, 0.0 }
 0x4f6   :  { %v1033_v4 = vmul.f32 %v1024_v60, %v978_v59  ;;  %v1052_v5 = vadd.f32 %v1045_v39, %v1035_v54  ;;  %v1036_v6 = vadd.f32 %v1032_v62, %v1015_v56  ;;  %v975_v38 = vpop.permute.xlu0 %974  ;;  %v465_v60 = vadd.f32 %v1899_v28, %v1889_v63 }
 0x4f7   :  { %v979_v37 = vsel %vm22_vm2, %v975_v38, 0.0  ;;  %v1391_v59 = vmul.f32 -1.442695, %v1902_v20 }
 0x4f8   :  { %v1037_v61 = vadd.f32 %v1033_v4, %v1016_v46  ;;  %v1053_v41 = vadd.f32 %v1050_v40, %v1036_v6  ;;  %v1034_v10 = vmul.f32 %v1029_v32, %v979_v37  ;;  %v1390_v46 = vmul.f32 -1.442695, %v1905_v2 }
 0x4fa   :  { %v1054_v13 = vadd.f32 %v1045_v39, %v1037_v61  ;;  %v1038_v9 = vadd.f32 %v1034_v10, %v1017_v3  ;;  %v1548_v42 = vpack.c.bf16 %v1053_v41, %v1052_v5  ;;  %v466_v39 = vadd.f32 %v1887_v17, %v1894_v16 }
 0x4fc   :  { %v1055_v50 = vadd.f32 %v1050_v40, %v1038_v9  ;;  %1549 = vmatprep.subr.bf16.mxu0 %v1548_v42  ;;  %v1388_v40 = vmul.f32 -1.442695, %v465_v60  ;;  %v1389_v27 = vmul.f32 -1.442695, %v466_v39 }
 0x4fd   :  { %1551 = vmatpush3.bf16.msra.mxu0 %v1548_v42  ;;  %v1433_v42 = vld [vmem:[%s2086_s1 + $0xc8] sm:$0xff] }
 0x4fe   :  { %v1552_v15 = vpack.c.bf16 %v1055_v50, %v1054_v13  ;;  %1600 = vpow2.f32 %v1388_v40  ;;  %v1432_v50 = vld [vmem:[%s2086_s1 + $0xc0] sm:$0xff] }
 0x4ff   :  { %1602 = vpow2.f32 %v1389_v27 }
 0x500   :  { %1515 = vmatmul.mubr.msk.f32.vlgmr.msra.gmra.mrb[6].mxu0 %vm42_vm0, %v1425_v12  ;;  %1553 = vmatprep.subr.bf16.mxu1 %v1552_v15 }
 0x501   :  { %1555 = vmatpush3.bf16.msra.mxu1 %v1552_v15 }
 0x504   :  { %1522 = vmatmul.mubr.msk.f32.vlgmr.msra.gmra.mrb[6].mxu1 %vm42_vm0, %v1425_v12 }
 0x505   :  { %v1221_v18 = vpop.permute.xlu1 %1220 }
 0x507   :  { %v1226_v7 = vpop.permute.xlu0 %1225 }
 0x508   :  { %v1601_v52 = vpop.eup %1600 }
 0x509   :  { %v481_v31 = vadd.f32 1.0, %v1601_v52  ;;  %v1603_v33 = vpop.eup %1602  ;;  %v1622_v52 = vld [vmem:[%s2085_s0 + $0x10] sm:$0xff] }
 0x50a   :  { %v482_v54 = vadd.f32 1.0, %v1603_v33  ;;  %v1623_v33 = vld [vmem:[%s2085_s0 + $0x18] sm:$0xff] }
 0x50b   :  { %1604 = vrcp.f32 %v481_v31 }
 0x50c   :  { %1606 = vrcp.f32 %v482_v54 }
 0x50d   :  { %1608 = vpow2.f32 %v1391_v59 }
 0x50e   :  { %1610 = vpow2.f32 %v1390_v46 }
 0x515   :  { %v1605_v19 = vpop.eup %1604 }
 0x516   :  { %v1607_v55 = vpop.eup %1606 }
 0x517   :  { %v1609_v13 = vpop.eup %1608 }
 0x518   :  { %v1611_v20 = vpop.eup %1610  ;;  %v484_v9 = vadd.f32 1.0, %v1609_v13 }
 0x519   :  { %v483_v2 = vadd.f32 1.0, %v1611_v20 }
 0x5d3   :  { %v1516_v14 = vpop.f32.mrb[6].mxu0 }
 0x5d4   :  { %v2023_v51 = vadd.f32 %v1516_v14, %v1226_v7  ;;  %v1134_v11 = vpop.f32.mrb[7].mxu0 }
 0x5d5   :  { %v2025_v1 = vadd.f32 %v1221_v18, %v1134_v11 }
 0x5d6   :  { %1240 = vadd.xlane.f32.xlu0 %v2023_v51 }
 0x5d7   :  { %1238 = vadd.xlane.f32.xlu1 %v2025_v1  ;;  %v1523_v21 = vpop.f32.mrb[6].mxu1 }
 0x5d8   :  { %v2029_v22 = vadd.f32 %v1523_v21, %v1226_v7  ;;  %v1209_v30 = vpop.f32.mrb[7].mxu1  ;;  %v1434_v21 = vld [vmem:[%s2086_s1 + $0xd0] sm:$0xff] }
 0x5d9   :  { %v2031_v23 = vadd.f32 %v1221_v18, %v1209_v30  ;;  %v1435_v18 = vld [vmem:[%s2086_s1 + $0xd8] sm:$0xff]  ;;  %s1651_s1 = smov [#allocation2]  }
 0x5da   :  { %s1353_s22 = sshll.u32 %s1651_s1, 4  ;;  %s1354_s22 = int_to_ptr.vmem [resolvable:$true] %s1353_s22 }
 0x5db   :  { %1244 = vadd.xlane.f32.xlu1 %v2029_v22  ;;  %1242 = vadd.xlane.f32.xlu0 %v2031_v23  ;;  %s1624_s5 = scalar_lea.vmem %s1354_s22, 512  ;;  %p1629_p1 = scmp.lt.s32.totalorder %s1354_s22, %s1354_s22 }
 0x5dc   :  { %p1625_p0 = scmp.ne.s32.totalorder %s1354_s22, %s1624_s5  ;;  %p1630_p2 = scmp.lt.s32.totalorder %s1624_s5, %s1624_s5 }
 0x5de   :  { %p1631_p3 = por %p1630_p2, %p1629_p1 }
 0x5e0   :  { %p1632_p4 = pnand %p1631_p3, %p1625_p0 }
 0x663   :  { %v1241_v25 = vpop.xlane.xlu0 %1240 }
 0x664   :  { %v1239_v32 = vpop.xlane.xlu1 %1238  ;;  %v1247_v8 = vmul.f32 0.0078125, %v1241_v25 }
 0x665   :  { %v1246_v47 = vmul.f32 0.0078125, %v1239_v32 }
 0x668   :  { %v1245_v44 = vpop.xlane.xlu1 %1244  ;;  %v1243_v45 = vpop.xlane.xlu0 %1242 }
 0x669   :  { %v1249_v48 = vmul.f32 0.0078125, %v1245_v44  ;;  %v1248_v35 = vmul.f32 0.0078125, %v1243_v45 }
 0x66b   :  { %v1251_v49 = vadd.f32 %v1249_v48, %v1247_v8  ;;  %v1250_v53 = vadd.f32 %v1248_v35, %v1246_v47 }
 0x66d   :  { %v1253_v34 = vmul.f32 0.5, %v1251_v49  ;;  %v1252_v24 = vmul.f32 0.5, %v1250_v53 }
 0x66f   :  { %v1255_v0 = vsub.f32 %v2023_v51, %v1253_v34  ;;  %v1254_v63 = vsub.f32 %v2025_v1, %v1252_v24  ;;  %v1257_v16 = vsub.f32 %v2029_v22, %v1253_v34  ;;  %v1256_v36 = vsub.f32 %v2031_v23, %v1252_v24 }
 0x671   :  { %v1259_v28 = vmul.f32 %v1255_v0, %v1255_v0  ;;  %v1258_v17 = vmul.f32 %v1254_v63, %v1254_v63  ;;  %v1261_v29 = vmul.f32 %v1257_v16, %v1257_v16  ;;  %v1260_v43 = vmul.f32 %v1256_v36, %v1256_v36 }
 0x673   :  { %1264 = vadd.xlane.f32.xlu1 %v1259_v28  ;;  %1262 = vadd.xlane.f32.xlu0 %v1258_v17 }
 0x677   :  { %1268 = vadd.xlane.f32.xlu1 %v1261_v29  ;;  %1266 = vadd.xlane.f32.xlu0 %v1260_v43 }
 0x688   :  { %1318 = vperm.xlu1 %1563, %v1605_v19  }
 0x68d   :  { %1323 = vperm.xlu0 %1562, %v1607_v55  }
 0x700   :  { %v1265_v56 = vpop.xlane.xlu1 %1264  ;;  %v1263_v57 = vpop.xlane.xlu0 %1262 }
 0x701   :  { %v1271_v4 = vmul.f32 0.0078125, %v1265_v56  ;;  %v1270_v58 = vmul.f32 0.0078125, %v1263_v57 }
 0x704   :  { %v1269_v26 = vpop.xlane.xlu1 %1268  ;;  %v1267_v62 = vpop.xlane.xlu0 %1266 }
 0x705   :  { %v1273_v5 = vmul.f32 0.0078125, %v1269_v26  ;;  %v1272_v6 = vmul.f32 0.0078125, %v1267_v62 }
 0x707   :  { %v1275_v61 = vadd.f32 %v1273_v5, %v1271_v4  ;;  %v1274_v38 = vadd.f32 %v1272_v6, %v1270_v58 }
 0x708   :  { %v1319_v40 = vpop.permute.xlu1 %1318 }
 0x709   :  { %v1277_v37 = vmul.f32 0.5, %v1275_v61  ;;  %v1276_v3 = vmul.f32 0.5, %v1274_v38 }
 0x70b   :  { %v1279_v41 = vadd.f32 1e-05, %v1277_v37  ;;  %v1278_v10 = vadd.f32 1e-05, %v1276_v3 }
 0x70c   :  { %v1324_v44 = vpop.permute.xlu0 %1323 }
 0x70d   :  { %1612 = vrsqrt.f32 %v1279_v41 }
 0x70e   :  { %1614 = vrsqrt.f32 %v1278_v10 }
 0x70f   :  { %1616 = vrcp.f32 %v484_v9 }
 0x710   :  { %1618 = vrcp.f32 %v483_v2 }
 0x717   :  { %v1613_v12 = vpop.eup %1612 }
 0x718   :  { %v1615_v15 = vpop.eup %1614  ;;  %v1283_v7 = vmul.f32 %v1613_v12, %v1433_v42 }
 0x719   :  { %v1282_v14 = vmul.f32 %v1615_v15, %v1432_v50  ;;  %v1617_v32 = vpop.eup %1616 }
 0x71a   :  { %1295 = vperm.xlu1 %1563, %v1283_v7   ;;  %v1285_v11 = vmul.f32 %v1283_v7, %v1253_v34  ;;  %v1619_v39 = vpop.eup %1618 }
 0x71b   :  { %1290 = vperm.xlu0 %1562, %v1282_v14   ;;  %v1284_v30 = vmul.f32 %v1282_v14, %v1252_v24 }
 0x71c   :  { %v1287_v25 = vsub.f32 %v1435_v18, %v1285_v11 }
 0x71d   :  { %v1286_v60 = vsub.f32 %v1434_v21, %v1284_v30 }
 0x71f   :  { %1309 = vperm.xlu0 %1562, %v1287_v25   ;;  %1304 = vperm.xlu1 %1563, %v1286_v60  }
 0x723   :  { %1333 = vperm.xlu0 %1562, %v1617_v32   ;;  %1328 = vperm.xlu1 %1563, %v1619_v39  }
 0x799   :  { %v1296_v45 = vpop.permute.xlu1 %1295 }
 0x79a   :  { %v1291_v8 = vpop.permute.xlu0 %1290  ;;  %v1299_v47 = vmul.f32 %v1296_v45, %v2023_v51  ;;  %v1301_v53 = vmul.f32 %v1296_v45, %v2029_v22  ;;  %v1620_v51 = vld [vmem:[%s2085_s0] sm:$0xff]  ;;  %v1621_v22 = vld [vmem:[%s2085_s0 + $0x8] sm:$0xff] }
 0x79b   :  { %v1298_v48 = vmul.f32 %v1291_v8, %v2025_v1  ;;  %v1300_v27 = vmul.f32 %v1291_v8, %v2031_v23 }
 0x79e   :  { %v1305_v35 = vpop.permute.xlu1 %1304  ;;  %v1310_v49 = vpop.permute.xlu0 %1309 }
 0x79f   :  { %v1312_v34 = vadd.f32 %v1305_v35, %v1298_v48  ;;  %v1313_v24 = vadd.f32 %v1310_v49, %v1299_v47  ;;  %v1314_v0 = vadd.f32 %v1305_v35, %v1300_v27  ;;  %v1315_v28 = vadd.f32 %v1310_v49, %v1301_v53 }
 0x7a1   :  { %v1336_v63 = vmul.f32 %v1319_v40, %v1312_v34  ;;  %v1337_v17 = vmul.f32 %v1324_v44, %v1313_v24 }
 0x7a2   :  { %v1329_v16 = vpop.permute.xlu1 %1328  ;;  %v1334_v36 = vpop.permute.xlu0 %1333 }
 0x7a3   :  { %v1340_v1 = vadd.f32 %v1620_v51, %v1336_v63  ;;  %v1341_v23 = vadd.f32 %v1621_v22, %v1337_v17  ;;  %v1338_v29 = vmul.f32 %v1329_v16, %v1314_v0  ;;  %v1339_v43 = vmul.f32 %v1334_v36, %v1315_v28 }
 0x7a5   :  { %1344 = vst [vmem:[#allocation2] sm:$0xff] %v1340_v1  ;;  %1345 = vst [vmem:[#allocation2 + $0x8] sm:$0xff] %v1341_v23  ;;  %v1342_v31 = vadd.f32 %v1622_v52, %v1338_v29  ;;  %v1343_v54 = vadd.f32 %v1623_v33, %v1339_v43 }
 0x7a7   :  { %1346 = vst [vmem:[#allocation2 + $0x10] sm:$0xff] %v1342_v31  ;;  %1347 = vst [vmem:[#allocation2 + $0x18] sm:$0xff] %v1343_v54 }
 0x7a8   :  { %1635 = shalt.err (!%p1632_p4)
}
 0x7a9   :  { %s1636_s9 = scalar_lea.hbm %s2088_s3, 512 }
 0x7aa   :  { %p1637_p5 = scmp.ne.s32.totalorder %s2088_s3, %s1636_s9  ;;  %p1640_p6 = scmp.lt.u32.totalorder %s1636_s9, %s2088_s3 }
 0x7ac   :  { %p1642_p7 = pnand %p1640_p6, %p1637_p5 }
 0x7ae   :  { %1645 = shalt.err (!%p1642_p7)
}
 0x7af   :  { %s1652_s28 = smov 128   ;;  %s1653_s13 = smov 8  }
 0x7b0   :  { %1359 = dma.vmem_to_hbm [thread:$0]  %s1354_s22, 512, %s2088_s3, [#allocation3], %s1652_s28, %s1652_s28, %s1653_s13  }
 0x7b1   :  { %1646 = dma.done.wait [#allocation3], 512  }
 0x7b2   :  { %1647 = vsyncadd [#allocation3], 4294966784 }
 0x7b3   :  { %1363 = vsyncpa [#allocation3], 1 }

</bundles_post_ra>
